<compile_context>
chip_gen: v7x
topology: tpu7x:2x2x1
jax: 0.10.0
libtpu: 0.0.40
codegen_flags: <defaults>
</compile_context>

<pallas_src>
import functools

import jax
import jax.numpy as jnp
from jax import lax
from jax.experimental import pallas as pl
from jax.experimental.pallas import tpu as pltpu

NEG_SLOPE = 0.01   # nn.LeakyReLU default used by the module


# ------------------------------ Pallas kernel -------------------------------

def _encoding_block_kernel(x_ref, w1_ref, w2_ref, vec_ref, o_ref, *, W, m2):
    # x_ref  : (m1, 9*Cin) bf16   im2col'ed input rows for this row-tile (halo incl.)
    # w1_ref : (9*Cin, NP) bf16   conv1 taps stacked along the contraction dim
    # w2_ref : (3, 3*NP, NP) bf16 conv2 taps, BN1 pre-folded, kx folded into K
    # vec_ref: (4, NP) f32        rows = [b1, b2_folded, bn2_scale, bn2_shift]
    # o_ref  : (m2, NP) bf16      full-width flat rows; wrap cols sliced outside
    npad = w1_ref.shape[-1]
    m_cat = m2 + 2 * W                     # rows of the kx-concatenated intermediate

    b1 = vec_ref[0:1, :]
    b2 = vec_ref[1:2, :]
    s2 = vec_ref[2:3, :]
    t2 = vec_ref[3:4, :]

    # ---- conv1: single MXU matmul (kx & ky already folded into K on the host) ----
    y = jnp.dot(x_ref[...], w1_ref[...], preferred_element_type=jnp.float32)
    y = y + b1
    y = jnp.maximum(y, NEG_SLOPE * y)      # LeakyReLU (mul+max, no compare/select)
    # BatchNorm #1 is folded into w2/b2 on the host -> no per-element pass here.
    yb = y.astype(jnp.bfloat16)            # single downcast of the intermediate

    # ---- conv2: kx folded into lanes (3 shifted copies), 3 W-aligned ky matmuls ---
    ycat = jnp.concatenate(
        [yb[0:m_cat, :], yb[1:m_cat + 1, :], yb[2:m_cat + 2, :]], axis=1)  # (m_cat, 3*NP)
    acc = jnp.zeros((m2, npad), jnp.float32)
    for ky in range(3):                    # static unroll, aligned row offsets ky*W
        acc = acc + jnp.dot(ycat[ky * W: ky * W + m2, :], w2_ref[ky],
                            preferred_element_type=jnp.float32)
    z = acc + b2                           # conv2 bias (+ folded BN1 shift term)
    z = jnp.maximum(z, NEG_SLOPE * z)      # LeakyReLU
    z = z * s2 + t2                        # BatchNorm #2 (inference, folded)
    o_ref[...] = z.astype(o_ref.dtype)     # bf16 writeback


# ------------------------------ host-side wrapper ----------------------------

def _pick_row_tile(h_out, w, max_tile_rows):
    """Largest divisor of h_out whose flat tile fits the row budget (16-aligned)."""
    for tr in range(h_out, 0, -1):
        if h_out % tr:
            continue
        if tr * w <= max_tile_rows and ((tr * w) % 16 == 0 or tr == h_out):
            return tr
    return h_out


def encoding_block_forward(params, x_nchw, *, max_tile_rows=4096):
    n, cin, h, w = x_nchw.shape
    assert h >= 5 and w >= 5, "need >=5x5 spatial for two valid 3x3 convs"
    cout, npad = params['cout'], params['npad']
    h_out = h - 4

    tr = _pick_row_tile(h_out, w, max_tile_rows)       # output image-rows per tile
    T = h_out // tr
    m2_t = tr * w                                       # conv2 rows per tile
    m1_t = -(-(m2_t + 2 * w + 2) // 16) * 16            # conv1 rows per tile (+slack)
    k1 = 9 * cin

    # NHWC -> flat (row = h*W + w), bf16 stream, zero rows appended for tap slack.
    x = jnp.transpose(x_nchw, (0, 2, 3, 1)).reshape(n, h * w, cin).astype(jnp.bfloat16)
    L = (T - 1) * m2_t + m1_t                           # im2col rows actually needed
    need = L + 2 * w + 2
    x = jnp.pad(x, ((0, 0), (0, max(0, need - h * w)), (0, 0)))

    # Host-side im2col over both kernel axes: K = 9*Cin (tap order ky*3 + kx).
    cols = [x[:, ky * w + kx: ky * w + kx + L, :] for ky in range(3) for kx in range(3)]
    x_im2col = jnp.concatenate(cols, axis=-1)           # (n, L, 9*Cin)

    # Overlapping row tiles with a 4-image-row (+slack) halo, materialized host-side.
    x_tiles = jnp.stack(
        [x_im2col[:, t * m2_t: t * m2_t + m1_t, :] for t in range(T)], axis=1)
    # -> (n, T, m1_t, 9*Cin)

    kern = functools.partial(_encoding_block_kernel, W=w, m2=m2_t)
    out = pl.pallas_call(
        kern,
        out_shape=jax.ShapeDtypeStruct((n, h_out * w, npad), jnp.bfloat16),
        grid=(n, T),
        in_specs=[
            pl.BlockSpec((None, None, m1_t, k1), lambda b, t: (b, t, 0, 0)),
            pl.BlockSpec((k1, npad), lambda b, t: (0, 0)),            # grid-invariant
            pl.BlockSpec((3, 3 * npad, npad), lambda b, t: (0, 0, 0)),  # grid-invariant
            pl.BlockSpec((4, npad), lambda b, t: (0, 0)),              # packed vectors
        ],
        out_specs=pl.BlockSpec((None, m2_t, npad), lambda b, t: (b, t, 0)),
        compiler_params=pltpu.CompilerParams(
            dimension_semantics=("parallel", "parallel"),
            vmem_limit_bytes=40 * 1024 * 1024),
    )(x_tiles, params['w1'], params['w2'], params['vecs'])

    # Drop wrap columns + channel lane-padding, back to NCHW f32.
    y = out.reshape(n, h_out, w, npad)[:, :, : w - 4, :cout].astype(jnp.float32)
    return jnp.transpose(y, (0, 3, 1, 2))


# ------------------------------ parameters -----------------------------------

def init_params(key, in_size, out_size, eps=1e-5):
    npad = 128 * (-(-out_size // 128))                  # lane-dense padded channels
    ks = jax.random.split(key, 12)
    w1_oihw = 0.2 * jax.random.normal(ks[0], (out_size, in_size, 3, 3), jnp.float32)
    b1 = 0.1 * jax.random.normal(ks[1], (out_size,), jnp.float32)
    w2_oihw = 0.2 * jax.random.normal(ks[2], (out_size, out_size, 3, 3), jnp.float32)
    b2 = 0.1 * jax.random.normal(ks[3], (out_size,), jnp.float32)
    # BatchNorm2d parameters (inference mode: gamma/beta + running stats).
    g1 = 1.0 + 0.1 * jax.random.normal(ks[4], (out_size,), jnp.float32)
    be1 = 0.1 * jax.random.normal(ks[5], (out_size,), jnp.float32)
    rm1 = 0.1 * jax.random.normal(ks[6], (out_size,), jnp.float32)
    rv1 = 1.0 + 0.5 * jax.random.uniform(ks[7], (out_size,), jnp.float32)
    g2 = 1.0 + 0.1 * jax.random.normal(ks[8], (out_size,), jnp.float32)
    be2 = 0.1 * jax.random.normal(ks[9], (out_size,), jnp.float32)
    rm2 = 0.1 * jax.random.normal(ks[10], (out_size,), jnp.float32)
    rv2 = 1.0 + 0.5 * jax.random.uniform(ks[11], (out_size,), jnp.float32)

    scale1 = g1 * lax.rsqrt(rv1 + eps)
    shift1 = be1 - rm1 * scale1
    scale2 = g2 * lax.rsqrt(rv2 + eps)
    shift2 = be2 - rm2 * scale2

    w1_hwio = jnp.transpose(w1_oihw, (2, 3, 1, 0))      # (3,3,Cin,Cout)
    w2_hwio = jnp.transpose(w2_oihw, (2, 3, 1, 0))      # (3,3,Cout,Cout)

    # conv1 weights: taps (ky,kx) stacked along K to match the host im2col order.
    w1_k = jnp.zeros((9 * in_size, npad), jnp.float32)
    w1_k = w1_k.at[:, :out_size].set(w1_hwio.reshape(9 * in_size, out_size))

    # BN1 folded into conv2 (exact in f32): w2' = w2*scale1[k]; b2' = b2 + sum w2*shift1[k].
    w2_f = w2_hwio * scale1[None, None, :, None]
    b2_f = b2 + jnp.sum(w2_hwio * shift1[None, None, :, None], axis=(0, 1, 2))
    w2_k = jnp.zeros((3, 3, npad, npad), jnp.float32)
    w2_k = w2_k.at[:, :, :out_size, :out_size].set(w2_f)
    w2_k = w2_k.reshape(3, 3 * npad, npad)              # [ky, kx*NP + k, n]

    def pad_row(v, fill=0.0):
        return jnp.full((npad,), fill, jnp.float32).at[:out_size].set(v)

    vecs = jnp.stack([pad_row(b1), pad_row(b2_f),
                      pad_row(scale2, 1.0), pad_row(shift2)], axis=0)  # (4, NP)

    return dict(
        cout=out_size, npad=npad,
        # kernel-side (padded / folded) layouts
        w1=w1_k.astype(jnp.bfloat16), w2=w2_k.astype(jnp.bfloat16), vecs=vecs,
        # reference-side (f32, unfolded) copies
        w1_hwio=w1_hwio, w2_hwio=w2_hwio, b1_raw=b1, b2_raw=b2,
        scale1=scale1, shift1=shift1, scale2=scale2, shift2=shift2,
    )


# --------------------------- independent reference ---------------------------

def reference_forward(params, x_nchw):
    # Module-order XLA conv path (conv -> LeakyReLU -> BN, twice), f32 math with the
    # same bf16 rounding points as the kernel's MXU operands.
    def q(a):
        return a.astype(jnp.bfloat16).astype(jnp.float32)

    dn = ('NHWC', 'HWIO', 'NHWC')
    hp = lax.Precision.HIGHEST
    x = q(jnp.transpose(x_nchw, (0, 2, 3, 1)).astype(jnp.float32))
    y = lax.conv_general_dilated(x, q(params['w1_hwio']), (1, 1), 'VALID',
                                 dimension_numbers=dn, precision=hp) + params['b1_raw']
    y = jnp.where(y >= 0, y, NEG_SLOPE * y)
    y = q(y)                                             # kernel's bf16 point (pre-BN)
    y = y * params['scale1'] + params['shift1']          # BatchNorm #1
    z = lax.conv_general_dilated(y, q(params['w2_hwio']), (1, 1), 'VALID',
                                 dimension_numbers=dn, precision=hp) + params['b2_raw']
    z = jnp.where(z >= 0, z, NEG_SLOPE * z)
    z = z * params['scale2'] + params['shift2']          # BatchNorm #2
    return jnp.transpose(z, (0, 3, 1, 2))


if __name__ == "__main__":
    key = jax.random.PRNGKey(0)
    kdata, kparam = jax.random.split(key)
    in_size, out_size = 8, 4
    n, h, w = 2, 16, 16

    x = jax.random.normal(kdata, (n, in_size, h, w), jnp.float32)
    params = init_params(kparam, in_size, out_size)

    # max_tile_rows=96 forces two row-tiles per image at this toy size so the
    # haloed row-tile grid axis is actually exercised.
    out = jax.block_until_ready(encoding_block_forward(params, x, max_tile_rows=96))
    assert out.shape == (n, out_size, h - 4, w - 4), out.shape

    ref = jax.block_until_ready(reference_forward(params, x))
    err = float(jnp.max(jnp.abs(out - ref)))
    assert jnp.allclose(out, ref, atol=3e-2, rtol=3e-2), f"max abs err = {err}"

    print("KERNEL_OK")
</pallas_src>

<mosaic_0001>
module attributes {stable_mosaic.version = 11 : i64} {
  func.func @_encoding_block_kernel(%arg0: i32, %arg1: i32, %arg2: memref<1x1x144x72xbf16, #tpu.memory_space<vmem>>, %arg3: memref<72x128xbf16, #tpu.memory_space<vmem>>, %arg4: memref<3x384x128xbf16, #tpu.memory_space<vmem>>, %arg5: memref<4x128xf32, #tpu.memory_space<vmem>>, %arg6: memref<1x96x128xbf16, #tpu.memory_space<vmem>>) attributes {dimension_semantics = [#tpu.dimension_semantics<parallel>, #tpu.dimension_semantics<parallel>], iteration_bounds = array<i64: 2, 2>, scalar_prefetch = 0 : i64, scratch_operands = 0 : i64, tpu.core_type = #tpu.core_type<tc>, window_params = [{transform_indices = @transform_0, window_bounds = array<i64: 1, 1, 144, 72>}, {pipeline_mode = #tpu.pipeline_mode<synchronous>, transform_indices = @transform_1, window_bounds = array<i64: 72, 128>}, {pipeline_mode = #tpu.pipeline_mode<synchronous>, transform_indices = @transform_2, window_bounds = array<i64: 3, 384, 128>}, {pipeline_mode = #tpu.pipeline_mode<synchronous>, transform_indices = @transform_3, window_bounds = array<i64: 4, 128>}, {transform_indices = @transform_4, window_bounds = array<i64: 1, 96, 128>}]} {
    %c0 = arith.constant 0 : index
    %c0_0 = arith.constant 0 : index
    %0 = vector.load %arg5[%c0, %c0_0] : memref<4x128xf32, #tpu.memory_space<vmem>>, vector<1x128xf32>
    %c1 = arith.constant 1 : index
    %c0_1 = arith.constant 0 : index
    %1 = vector.load %arg5[%c1, %c0_1] : memref<4x128xf32, #tpu.memory_space<vmem>>, vector<1x128xf32>
    %c2 = arith.constant 2 : index
    %c0_2 = arith.constant 0 : index
    %2 = vector.load %arg5[%c2, %c0_2] : memref<4x128xf32, #tpu.memory_space<vmem>>, vector<1x128xf32>
    %c3 = arith.constant 3 : index
    %c0_3 = arith.constant 0 : index
    %3 = vector.load %arg5[%c3, %c0_3] : memref<4x128xf32, #tpu.memory_space<vmem>>, vector<1x128xf32>
    %c0_4 = arith.constant 0 : index
    %c0_5 = arith.constant 0 : index
    %c0_6 = arith.constant 0 : index
    %c0_7 = arith.constant 0 : index
    %4 = vector.load %arg2[%c0_4, %c0_5, %c0_6, %c0_7] : memref<1x1x144x72xbf16, #tpu.memory_space<vmem>>, vector<1x1x144x72xbf16>
    %5 = vector.shape_cast %4 : vector<1x1x144x72xbf16> to vector<144x72xbf16>
    %c0_8 = arith.constant 0 : index
    %c0_9 = arith.constant 0 : index
    %6 = vector.load %arg3[%c0_8, %c0_9] : memref<72x128xbf16, #tpu.memory_space<vmem>>, vector<72x128xbf16>
    %cst = arith.constant dense<0.000000e+00> : vector<144x128xf32>
    %7 = tpu.matmul %5, %6, %cst {dimension_numbers = #tpu.dot_dimension_numbers<[1], [0], [0], [1], [0, 0, 1, 1], [], []>} : vector<144x72xbf16>, vector<72x128xbf16>, vector<144x128xf32> -> vector<144x128xf32>
    %8 = vector.broadcast %0 : vector<1x128xf32> to vector<144x128xf32>
    %9 = arith.addf %7, %8 : vector<144x128xf32>
    %cst_10 = arith.constant 0.00999999977 : f32
    %10 = vector.broadcast %cst_10 : f32 to vector<144x128xf32>
    %11 = arith.mulf %10, %9 : vector<144x128xf32>
    %12 = arith.maximumf %9, %11 : vector<144x128xf32>
    %13 = arith.truncf %12 : vector<144x128xf32> to vector<144x128xbf16>
    %14 = vector.extract_strided_slice %13 {offsets = [0, 0], sizes = [128, 128], strides = [1, 1]} : vector<144x128xbf16> to vector<128x128xbf16>
    %15 = vector.extract_strided_slice %13 {offsets = [1, 0], sizes = [128, 128], strides = [1, 1]} : vector<144x128xbf16> to vector<128x128xbf16>
    %16 = vector.extract_strided_slice %13 {offsets = [2, 0], sizes = [128, 128], strides = [1, 1]} : vector<144x128xbf16> to vector<128x128xbf16>
    %17 = tpu.concatenate %14, %15, %16 in 1 : vector<128x128xbf16>, vector<128x128xbf16>, vector<128x128xbf16> -> vector<128x384xbf16>
    %cst_11 = arith.constant 0.000000e+00 : f32
    %18 = vector.broadcast %cst_11 : f32 to vector<96x128xf32>
    %19 = vector.extract_strided_slice %17 {offsets = [0, 0], sizes = [96, 384], strides = [1, 1]} : vector<128x384xbf16> to vector<96x384xbf16>
    %c0_12 = arith.constant 0 : index
    %c0_13 = arith.constant 0 : index
    %c0_14 = arith.constant 0 : index
    %20 = vector.load %arg4[%c0_12, %c0_13, %c0_14] : memref<3x384x128xbf16, #tpu.memory_space<vmem>>, vector<1x384x128xbf16>
    %21 = vector.shape_cast %20 : vector<1x384x128xbf16> to vector<384x128xbf16>
    %cst_15 = arith.constant dense<0.000000e+00> : vector<96x128xf32>
    %22 = tpu.matmul %19, %21, %cst_15 {dimension_numbers = #tpu.dot_dimension_numbers<[1], [0], [0], [1], [0, 0, 1, 1], [], []>} : vector<96x384xbf16>, vector<384x128xbf16>, vector<96x128xf32> -> vector<96x128xf32>
    %23 = arith.addf %18, %22 : vector<96x128xf32>
    %24 = vector.extract_strided_slice %17 {offsets = [16, 0], sizes = [96, 384], strides = [1, 1]} : vector<128x384xbf16> to vector<96x384xbf16>
    %c1_16 = arith.constant 1 : index
    %c0_17 = arith.constant 0 : index
    %c0_18 = arith.constant 0 : index
    %25 = vector.load %arg4[%c1_16, %c0_17, %c0_18] : memref<3x384x128xbf16, #tpu.memory_space<vmem>>, vector<1x384x128xbf16>
    %26 = vector.shape_cast %25 : vector<1x384x128xbf16> to vector<384x128xbf16>
    %cst_19 = arith.constant dense<0.000000e+00> : vector<96x128xf32>
    %27 = tpu.matmul %24, %26, %cst_19 {dimension_numbers = #tpu.dot_dimension_numbers<[1], [0], [0], [1], [0, 0, 1, 1], [], []>} : vector<96x384xbf16>, vector<384x128xbf16>, vector<96x128xf32> -> vector<96x128xf32>
    %28 = arith.addf %23, %27 : vector<96x128xf32>
    %29 = vector.extract_strided_slice %17 {offsets = [32, 0], sizes = [96, 384], strides = [1, 1]} : vector<128x384xbf16> to vector<96x384xbf16>
    %c2_20 = arith.constant 2 : index
    %c0_21 = arith.constant 0 : index
    %c0_22 = arith.constant 0 : index
    %30 = vector.load %arg4[%c2_20, %c0_21, %c0_22] : memref<3x384x128xbf16, #tpu.memory_space<vmem>>, vector<1x384x128xbf16>
    %31 = vector.shape_cast %30 : vector<1x384x128xbf16> to vector<384x128xbf16>
    %cst_23 = arith.constant dense<0.000000e+00> : vector<96x128xf32>
    %32 = tpu.matmul %29, %31, %cst_23 {dimension_numbers = #tpu.dot_dimension_numbers<[1], [0], [0], [1], [0, 0, 1, 1], [], []>} : vector<96x384xbf16>, vector<384x128xbf16>, vector<96x128xf32> -> vector<96x128xf32>
    %33 = arith.addf %28, %32 : vector<96x128xf32>
    %34 = vector.broadcast %1 : vector<1x128xf32> to vector<96x128xf32>
    %35 = arith.addf %33, %34 : vector<96x128xf32>
    %cst_24 = arith.constant 0.00999999977 : f32
    %36 = vector.broadcast %cst_24 : f32 to vector<96x128xf32>
    %37 = arith.mulf %36, %35 : vector<96x128xf32>
    %38 = arith.maximumf %35, %37 : vector<96x128xf32>
    %39 = vector.broadcast %2 : vector<1x128xf32> to vector<96x128xf32>
    %40 = arith.mulf %38, %39 : vector<96x128xf32>
    %41 = vector.broadcast %3 : vector<1x128xf32> to vector<96x128xf32>
    %42 = arith.addf %40, %41 : vector<96x128xf32>
    %43 = arith.truncf %42 : vector<96x128xf32> to vector<96x128xbf16>
    %c0_25 = arith.constant 0 : index
    %c0_26 = arith.constant 0 : index
    %c0_27 = arith.constant 0 : index
    %44 = vector.load %arg6[%c0_25, %c0_26, %c0_27] : memref<1x96x128xbf16, #tpu.memory_space<vmem>>, vector<1x96x128xbf16>
    %45 = vector.shape_cast %44 : vector<1x96x128xbf16> to vector<96x128xbf16>
    %46 = vector.shape_cast %43 : vector<96x128xbf16> to vector<1x96x128xbf16>
    tpu.vector_store %arg6[%c0_25, %c0_26, %c0_27], %46 {strides = array<i32>} : memref<1x96x128xbf16, #tpu.memory_space<vmem>>, vector<1x96x128xbf16>,
    return
  }
  func.func @transform_0(%arg0: i32, %arg1: i32) -> (i32, i32, i32, i32) {
    %c0_i32 = arith.constant 0 : i32
    %c0_i32_0 = arith.constant 0 : i32
    %c0_i32_1 = arith.constant 0 : i32
    return %arg0, %arg1, %c0_i32, %c0_i32_0 : i32, i32, i32, i32
  }
  func.func @transform_1(%arg0: i32, %arg1: i32) -> (i32, i32) {
    %c0_i32 = arith.constant 0 : i32
    %c0_i32_0 = arith.constant 0 : i32
    %c0_i32_1 = arith.constant 0 : i32
    return %c0_i32, %c0_i32_0 : i32, i32
  }
  func.func @transform_2(%arg0: i32, %arg1: i32) -> (i32, i32, i32) {
    %c0_i32 = arith.constant 0 : i32
    %c0_i32_0 = arith.constant 0 : i32
    %c0_i32_1 = arith.constant 0 : i32
    %c0_i32_2 = arith.constant 0 : i32
    return %c0_i32, %c0_i32_0, %c0_i32_1 : i32, i32, i32
  }
  func.func @transform_3(%arg0: i32, %arg1: i32) -> (i32, i32) {
    %c0_i32 = arith.constant 0 : i32
    %c0_i32_0 = arith.constant 0 : i32
    %c0_i32_1 = arith.constant 0 : i32
    return %c0_i32, %c0_i32_0 : i32, i32
  }
  func.func @transform_4(%arg0: i32, %arg1: i32) -> (i32, i32, i32) {
    %c0_i32 = arith.constant 0 : i32
    %c0_i32_0 = arith.constant 0 : i32
    return %arg0, %arg1, %c0_i32 : i32, i32, i32
  }
}

</mosaic_0001>

<bundles_post_ra>
// kernel: tpu_custom_call.1
= control target key start
LH: loop header
LB: loop body
LE: loop exit
PB: predicated region body
PF: predicated region fallthrough
CT: control target
= control target key end

     0   :  { %s3525_s0 = inlined_call_operand.hbm [shape: bf16[2,2,144,72], index: 0, kind: input, shape index: {}]   ;;  %s3526_s1 = inlined_call_operand.hbm [shape: bf16[72,128], index: 1, kind: input, shape index: {}]   ;;  %s3527_s2 = inlined_call_operand.hbm [shape: bf16[3,384,128], index: 2, kind: input, shape index: {}]   ;;  %s3528_s3 = inlined_call_operand.vmem [shape: f32[4,128], index: 3, kind: input, shape index: {}]   ;;  %s3529_s4 = inlined_call_operand.hbm [shape: bf16[2,192,128], index: 4, kind: output, shape index: {}]  }
   0x1   :  { %3540 = sst [smem:[#allocation16_spill]] %s3526_s1 }
   0x2   :  { %3541 = sst [smem:[#allocation17_spill]] %s3527_s2 }
   0x3   :  { %9 = vsyncpa [#allocation3], 0 }
   0x4   :  { %11 = vsyncpa [#allocation3 + $0x1], 0 }
   0x5   :  { %12 = vsyncpa [#allocation6], 0 }
   0x6   :  { %13 = vsyncpa [#allocation4], 0 }
   0x7   :  { %15 = vsyncpa [#allocation4 + $0x1], 0  ;;  %s2994_s15 = smov 0   ;;  %s2996_s16 = smov 0  }
   0x8   :  { %s2998_s17 = smov 0   ;;  %s3000_s18 = smov 0  }
   0x9   :  { %s3002_s19 = smov 0   ;;  %s3004_s20 = smov 0  }
   0xa   :  { %s3006_s21 = smov 0   ;;  %s3008_s22 = smov 0  }
   0xb LB: > { %3542 = sst [smem:[#allocation12_spill]] %s2949_s20  ;;  %s1999_s23 = sadd.s32 4294967295, %s2957_s22   ;;  %s2957_s22 = sphi %s3008_s22, %s21_s22   ;;  %s2953_s21 = sphi %s3006_s21, %s3572_s21   ;;  %s2949_s20 = sphi %s3004_s20, %s3566_s20   ;;  %s2945_s19 = sphi %s3002_s19, %s3571_s19   ;;  %s2941_s18 = sphi %s3000_s18, %s3565_s18   ;;  %s2937_s17 = sphi %s2998_s17, %s3570_s17   ;;  %s2933_s16 = sphi %s2996_s16, %s3569_s16   ;;  %s2929_s15 = sphi %s2994_s15, %s3568_s15  }
   0xc   : > { %s2000_s24 = sadd.s32 4294967294, %s2957_s22   ;;  %p55_p0 = scmp.ne.s32.totalorder %s2933_s16, %s2929_s15 }
   0xd   : > { %p3038_p1 = scmp.eq.s32.totalorder %s1999_s23, 0  ;;  %p3042_p2 = scmp.eq.s32.totalorder %s1999_s23, 3 }
   0xe   : > { %p150_p3 = scmp.eq.s32.totalorder %s2000_s24, 3  ;;  %p2001_p5 = scmp.ge.s32.totalorder %s2957_s22, 1 }
   0xf   : > { %s3543_s25 = scalar_select %p3038_p1, 1, 0 }
  0x10   : > { %s3544_s26 = scalar_select %p3042_p2, 1, 0 }
  0x11   : > { %p3048_p4 = por %p3038_p1, %p55_p0  ;;  %p3053_p6 = por %p150_p3, %p55_p0 }
  0x12   : > { %p157_p7 = scmp.lt.s32.totalorder %s2957_s22, 5  ;;  %s2959_s30 = smov [#allocation5]  }
  0x13   : > { %s3545_s27 = scalar_select %p3048_p4, 1, 0 }
  0x14   : > { %s3546_s28 = scalar_select %p3053_p6, 1, 0 }
  0x15   : > { %p3058_p8 = pnand %p2001_p5, %p157_p7  ;;  %s169_s5 = sshll.u32 %s2959_s30, 4  ;;  %s170_s5 = int_to_ptr.vmem [resolvable:$true] %s169_s5 }
  0x16   : > { %3547 = sst [smem:[#allocation13_spill]] %s3546_s28  ;;  %s2960_s7 = smov [#allocation7]  }
  0x17   : > { %s3548_s29 = scalar_select %p3058_p8, 1, 0 }
  0x18   : > { %p2590_p9 = pneg %p3058_p8  ;;  %s182_s8 = sshll.u32 %s2960_s7, 4  ;;  %s3070_s8 = int_to_ptr.vmem [resolvable:$true] %s182_s8 }
  0x19   : > { %s3550_s1 = sld [smem:[#allocation16_spill]] }
  0x1a   : > { %p3066_p10 = pnand %p2590_p9, %p3038_p1 }
  0x1c   : > { %p2771_p12 = pneg %p3066_p10 }
  0x1f   : > { %s2769_s11 = scalar_lea.hbm %s3550_s1, 576 }
  0x20   : > { %p2770_p11 = scmp.ne.s32.totalorder %s3550_s1, %s2769_s11  ;;  %p2776_p3 = scmp.lt.u32.totalorder %s2769_s11, %s3550_s1 }
  0x22   : > { %p2772_p13 = pnand %p2771_p12, %p2770_p11 }
  0x24   : > { %p2773_p0 = pneg %p2772_p13 }
  0x26   : > { %p2778_p5 = pnand %p2776_p3, %p2773_p0 }
  0x28   : > { %2781 = shalt.err (!%p2778_p5)
}
  0x29   : > { %s2782_s24 = scalar_lea.vmem %s170_s5, 576  ;;  %p2790_p1 = scmp.lt.s32.totalorder %s170_s5, %s170_s5 }
  0x2a   : > { %p2783_p7 = scmp.ne.s32.totalorder %s170_s5, %s2782_s24  ;;  %p2791_p4 = scmp.lt.s32.totalorder %s2782_s24, %s2782_s24 }
  0x2c   : > { %p2785_p9 = pnand %p2783_p7, %p2771_p12  ;;  %p2792_p8 = por %p2791_p4, %p2790_p1 }
  0x2e   : > { %p2786_p6 = pneg %p2785_p9 }
  0x30   : > { %p2793_p2 = pnand %p2792_p8, %p2786_p6 }
  0x32   : > { %2796 = shalt.err (!%p2793_p2)
}
  0x33   : > { %s3535_s30 = smov 64   ;;  %s3536_s7 = smov 4  }
  0x34   : > { %2593 = dma.hbm_to_vmem [thread:$0]  (!%p3066_p10), %s3550_s1, 576, %s170_s5, [#allocation6], %s3535_s30, %s3535_s30, %s3536_s7  }
  0x35   : > { %s3551_s2 = sld [smem:[#allocation17_spill]] }
  0x3b   : > { %s2797_s13 = scalar_lea.hbm %s3551_s2, 9216 }
  0x3c   : > { %p2798_p1 = scmp.ne.s32.totalorder %s3551_s2, %s2797_s13  ;;  %p2804_p6 = scmp.lt.u32.totalorder %s2797_s13, %s3551_s2 }
  0x3e   : > { %p2800_p2 = pnand %p2798_p1, %p2771_p12 }
  0x40   : > { %p2801_p4 = pneg %p2800_p2 }
  0x42   : > { %p2806_p8 = pnand %p2804_p6, %p2801_p4 }
  0x44   : > { %2809 = shalt.err (!%p2806_p8)
}
  0x45   : > { %s2810_s5 = scalar_lea.vmem %s3070_s8, 9216  ;;  %p2818_p3 = scmp.lt.s32.totalorder %s3070_s8, %s3070_s8 }
  0x46   : > { %p2811_p11 = scmp.ne.s32.totalorder %s3070_s8, %s2810_s5  ;;  %p2819_p5 = scmp.lt.s32.totalorder %s2810_s5, %s2810_s5 }
  0x48   : > { %p2813_p13 = pnand %p2811_p11, %p2771_p12  ;;  %p2820_p7 = por %p2819_p5, %p2818_p3 }
  0x4a   : > { %p2814_p0 = pneg %p2813_p13 }
  0x4c   : > { %p2821_p9 = pnand %p2820_p7, %p2814_p0 }
  0x4e   : > { %2824 = shalt.err (!%p2821_p9)
}
  0x4f   : > { %2596 = dma.hbm_to_vmem [thread:$0]  (!%p3066_p10), %s3551_s2, 9216, %s3070_s8, [#allocation6], %s3535_s30, %s3535_s30, %s3536_s7  }
  0x50   : > { %s30_s6 = sadd.s32 1, %s2949_s20  ;;  %s33_s10 = sadd.s32 1, %s2953_s21 }
  0x51   : > { %p31_p12 = scmp.ge.s32.totalorder %s30_s6, 2  ;;  %s42_s11 = sadd.s32 1, %s2937_s17 }
  0x52   : > { %p49_p1 = scmp.ne.s32.totalorder %s2937_s17, %s2933_s16  ;;  %p50_p2 = scmp.eq.s32.totalorder %s2957_s22, 0 }
  0x53   : > { %s3574_s6 = smov (%p31_p12, %s30_s6), 0  ;;  %s3576_s10 = smov (!%p31_p12, %s33_s10), %s2953_s21 }
  0x54   : > { %3552 = sst [smem:[#allocation14_spill]] %s3574_s6  ;;  %s38_s12 = ssub.s32 %s2949_s20, %s3574_s6 }
  0x55   : > { %p3136_p4 = por %p50_p2, %p49_p1  ;;  %p35_p10 = scmp.ge.s32.totalorder %s3576_s10, 2 }
  0x56   : > { %p3554_p6 = scmp.ne.s32.totalorder %s3544_s26, 0  ;;  %p2607_p11 = scmp.lt.s32.totalorder %s2957_s22, 4 }
  0x57   : > { %s199_s14 = sand.u32 1, %s2937_s17   ;;  %s3578_s10 = smov (%p35_p10, %s3576_s10), 0 }
  0x58   : > { %p3142_p8 = por %p3554_p6, %p49_p1  ;;  %3556 = sst [smem:[#allocation15_spill]] %s3578_s10 }
  0x59   : > { %s2572_s23 = smul.u32 72, %s199_s14  ;;  %s37_s24 = ssub.s32 %s2953_s21, %s3578_s10 }
  0x5a   : > { %s2573_s5 = smul.u32 18, %s2949_s20  ;;  %s39_s28 = sor.u32 %s38_s12, %s37_s24 }
  0x5b   : > { %p40_p13 = scmp.eq.s32.totalorder %s39_s28, 0  ;;  %s2574_s9 = smul.u32 36, %s2953_s21 }
  0x5c   : > { %s203_s30 = scalar_lea.vmem [#allocation2], %s2572_s23  ;;  %p3156_p0 = pnand %p2607_p11, %p3136_p4 }
  0x5d   : > { %s212_s7 = sshll.u32 %s203_s30, 4  ;;  %s209_s2 = sadd.s32 %s2574_s9, %s2573_s5  ;;  %s3163_s7 = int_to_ptr.vmem [resolvable:$true] %s212_s7 }
  0x5e   : > { %s3161_s1 = scalar_select %p40_p13, %s2937_s17, %s42_s11  }
  0x5f   : > { %s2005_s6 = sshll.u32 %s209_s2, 6  ;;  %s3170_s30 = scalar_lea.sflag [#allocation3], %s199_s14 }
  0x60   : > { %s3168_s12 = scalar_lea.hbm %s3525_s0, %s2005_s6  ;;  %p2827_p5 = pneg %p3156_p0 }
  0x61   : > { %s2825_s13 = scalar_lea.hbm %s3168_s12, 1152  ;;  %s2830_s20 = scalar_lea.hbm %s3525_s0, 4608 }
  0x62   : > { %p2826_p3 = scmp.ne.s32.totalorder %s3168_s12, %s2825_s13  ;;  %p2831_p12 = scmp.lt.u32.totalorder %s3168_s12, %s3525_s0 }
  0x63   : > { %p2832_p1 = scmp.lt.u32.totalorder %s2830_s20, %s2825_s13  ;;  %p2834_p4 = scmp.lt.u32.totalorder %s2825_s13, %s3168_s12 }
  0x64   : > { %p2828_p7 = pnand %p2827_p5, %p2826_p3 }
  0x65   : > { %p2833_p2 = por %p2832_p1, %p2831_p12 }
  0x66   : > { %p2829_p9 = pneg %p2828_p7 }
  0x67   : > { %p2835_p10 = por %p2834_p4, %p2833_p2 }
  0x69   : > { %p2836_p6 = pnand %p2835_p10, %p2829_p9 }
  0x6b   : > { %2839 = shalt.err (!%p2836_p6)
}
  0x6c   : > { %s2840_s14 = scalar_lea.vmem %s3163_s7, 1152  ;;  %s2963_s23 = smov [#allocation2]  }
  0x6d   : > { %p2841_p11 = scmp.ne.s32.totalorder %s3163_s7, %s2840_s14  ;;  %s2845_s24 = sshll.u32 %s2963_s23, 4  ;;  %s2846_s24 = int_to_ptr.vmem [resolvable:$false] %s2845_s24 }
  0x6e   : > { %s2847_s5 = scalar_lea.vmem %s2846_s24, 2304  ;;  %p2848_p7 = scmp.lt.s32.totalorder %s3163_s7, %s2846_s24 }
  0x6f   : > { %p2843_p13 = pnand %p2841_p11, %p2827_p5  ;;  %p2849_p12 = scmp.lt.s32.totalorder %s2847_s5, %s2840_s14 }
  0x71   : > { %p2844_p3 = pneg %p2843_p13  ;;  %p2850_p1 = por %p2849_p12, %p2848_p7 }
  0x73   : > { %p2851_p2 = pnand %p2850_p1, %p2844_p3 }
  0x75   : > { %2854 = shalt.err (!%p2851_p2)
}
  0x76   : > { %s3558_s28 = smov 4   ;;  %s3559_s9 = smov 64  }
  0x77   : > { %2600 = dma.hbm_to_vmem [thread:$0]  (!%p3156_p0), %s3168_s12, 1152, %s3163_s7, %s3170_s30, %s3559_s9, %s3559_s9, %s3558_s28  }
  0x78   : > { %p3560_p5 = scmp.ne.s32.totalorder %s3548_s29, 0 }
  0x79   : > { %s3204_s13 = sand.u32 (!%p3560_p5), 1, %s2933_s16   ;;  %p3561_p9 = scmp.ne.s32.totalorder (!%p3560_p5), %s3545_s27, 0 }
  0x7a   : > { %224 = sbr.rel (%p3560_p5) target bundleno = 770 (0x302), region = 36  ;;  %s227_s11 = scalar_lea.sflag (!%p3560_p5), [#allocation3], %s3204_s13 }
  0x7b   : > { %s2575_s2 = smul.u32 (!%p3560_p5), 72, %s3204_s13 }
  0x7d   : > { %s3208_s20 = scalar_lea.vmem (!%p3560_p5), [#allocation2], %s2575_s2 }
  0x81   : > { %2916 = dma.done.wait (%p3561_p9), %s227_s11, 1152  }
  0x82   : > { %2918 = vsyncadd (%p3561_p9), %s227_s11, 4294966144  ;;  %p3562_p0 = scmp.ne.s32.totalorder %s3543_s25, 0 }
  0x84   : > { %2920 = dma.done.wait (%p3562_p0), [#allocation6], 9792  }
  0x85   : > { %2922 = vsyncadd (%p3562_p0), [#allocation6], 4294957504  ;;  %v2964_v0 = vmov 0.0   ;;  %vm2965_vm0 = vmmov 0   ;;  %v2683_v1 = vld [vmem:[#allocation5] sm:$0xff]   ;;  %v2684_v2 = vld [vmem:[#allocation5 + $0x8] sm:$0xff]  }
  0x86   : > { %2382 = vmatprep.subr.bf16.mxu0 %v2964_v0  ;;  %2392 = vmatprep.mubr.msk.bf16.mxu0 %vm2965_vm0, %v2964_v0  ;;  %v2685_v3 = vld [vmem:[#allocation5 + $0x10] sm:$0xff]   ;;  %v2686_v4 = vld [vmem:[#allocation5 + $0x18] sm:$0xff]   ;;  %v2687_v5 = vld [vmem:[#allocation5 + $0x20] ss:$0 sps:$4 sm:$0xff]   ;;  %vm400_vm1 = vcmask 1043456   ;;  %vm372_vm2 = vcmask 588800  }
  0x87   : > { %2383 = vmatpush3.bf16.msra.mxu0 %v2683_v1  ;;  %v402_v6 = vsel %vm400_vm1, %v2687_v5, 0  ;;  %v2697_v7 = vld [vmem:[#allocation7 + $0x40] sm:$0xff]   ;;  %v2688_v8 = vld [vmem:[%s3208_s20] sm:$0xff]   ;;  %vm640_vm3 = vcmask 1046528   ;;  %vm554_vm4 = vsmask.f32 7424 }
  0x88   : > { %2384 = vmatprep.subr.bf16.mxu0 %v2964_v0  ;;  %v2698_v9 = vld [vmem:[#allocation7] sm:$0xff]   ;;  %v2699_v10 = vld [vmem:[#allocation7 + $0x48] sm:$0xff]   ;;  %v2703_v21 = vld [vmem:[#allocation7 + $0x50] sm:$0xff]   ;;  %s2576_s10 = smul.u32 48, %s3204_s13  ;;  %s1875_s11 = scalar_lea.sflag [#allocation4], %s3204_s13 }
  0x89   : > { %v2700_v11 = vld [vmem:[#allocation7 + $0x8] sm:$0xff]   ;;  %v2689_v12 = vld [vmem:[%s3208_s20 + $0x8] sm:$0xff]   ;;  %s1882_s23 = smul.u32 12, %s2941_s18  ;;  %s2966_s25 = smov [#allocation8]  }
  0x8a   : > { %v2690_v13 = vld [vmem:[%s3208_s20 + $0x10] sm:$0xff]   ;;  %v2691_v14 = vld [vmem:[%s3208_s20 + $0x18] sm:$0xff]   ;;  %v2692_v15 = vld [vmem:[%s3208_s20 + $0x20] sm:$0xff]   ;;  %s3432_s14 = scalar_lea.vmem [#allocation8], %s2576_s10  ;;  %s2577_s24 = smul.u32 24, %s2945_s19 }
  0x8b   : > { %2385 = vmatpush3.bf16.msra.mxu0 %v2684_v2  ;;  %v2693_v16 = vld [vmem:[%s3208_s20 + $0x28] sm:$0xff]   ;;  %v2694_v17 = vld [vmem:[%s3208_s20 + $0x30] sm:$0xff]   ;;  %v2695_v18 = vld [vmem:[%s3208_s20 + $0x38] sm:$0xff]   ;;  %s1890_s5 = sshll.u32 %s3432_s14, 4  ;;  %s2859_s27 = sshll.u32 %s2966_s25, 4  ;;  %s3469_s5 = int_to_ptr.vmem [resolvable:$true] %s1890_s5  ;;  %s2860_s27 = int_to_ptr.vmem [resolvable:$false] %s2859_s27 }
  0x8c   : > { %2386 = vmatprep.subr.bf16.mxu0 %v2964_v0  ;;  %v2696_v19 = vld [vmem:[%s3208_s20 + $0x40] sm:$0xff]   ;;  %v2701_v20 = vld [vmem:[#allocation7 + $0x100] sm:$0xff]   ;;  %s1887_s18 = sadd.s32 %s2577_s24, %s1882_s23  ;;  %s2855_s20 = scalar_lea.vmem %s3469_s5, 768 }
  0x8d   : > { %v2702_v22 = vld [vmem:[#allocation7 + $0xc0] sm:$0xff]   ;;  %v2704_v23 = vld [vmem:[#allocation7 + $0x10] sm:$0xff]   ;;  %2184 = vmatprep.subr.bf16.mxu1 %v2701_v20  ;;  %v2705_v24 = vld [vmem:[#allocation7 + $0x108] sm:$0xff]   ;;  %s2120_s19 = sshll.u32 %s1887_s18, 6  ;;  %p2856_p4 = scmp.ne.s32.totalorder %s3469_s5, %s2855_s20 }
  0x8e   : > { %2185 = vmatpush3.bf16.msra.mxu1 %v2702_v22  ;;  %v2707_v25 = vld [vmem:[#allocation7 + $0x58] sm:$0xff]   ;;  %v2706_v26 = vld [vmem:[#allocation7 + $0xc8] sm:$0xff]   ;;  %v2709_v28 = vld [vmem:[#allocation7 + $0x110] sm:$0xff]   ;;  %s3467_s2 = scalar_lea.hbm %s3529_s4, %s2120_s19  ;;  %s2861_s29 = scalar_lea.vmem %s2860_s27, 1536 }
  0x8f   : > { %2387 = vmatpush3.bf16.msra.mxu0 %v2685_v3  ;;  %v2708_v27 = vld [vmem:[#allocation7 + $0x18] sm:$0xff]   ;;  %2186 = vmatprep.subr.bf16.mxu1 %v2705_v24  ;;  %v2711_v29 = vld [vmem:[#allocation7 + $0x60] sm:$0xff]   ;;  %v2710_v30 = vld [vmem:[#allocation7 + $0xd0] sm:$0xff]   ;;  %p2857_p10 = pnand %p2856_p4, %p3142_p8  ;;  %p2862_p11 = scmp.lt.s32.totalorder %s3469_s5, %s2860_s27 }
  0x90   : > { %2388 = vmatprep.subr.bf16.mxu0 %v2964_v0  ;;  %v2712_v31 = vld [vmem:[#allocation7 + $0x20] sm:$0xff]   ;;  %v2713_v32 = vld [vmem:[#allocation7 + $0x118] sm:$0xff]   ;;  %v2715_v33 = vld [vmem:[#allocation7 + $0x68] sm:$0xff]   ;;  %p2863_p13 = scmp.lt.s32.totalorder %s2861_s29, %s2855_s20 }
  0x91   : > { %v2714_v34 = vld [vmem:[#allocation7 + $0xd8] sm:$0xff]   ;;  %v2716_v35 = vld [vmem:[#allocation7 + $0x28] sm:$0xff]   ;;  %v2717_v36 = vld [vmem:[#allocation7 + $0x120] sm:$0xff]   ;;  %p2858_p6 = pneg %p2857_p10 }
  0x92   : > { %2187 = vmatpush3.bf16.msra.mxu1 %v2706_v26  ;;  %v2719_v37 = vld [vmem:[#allocation7 + $0x70] sm:$0xff]   ;;  %v2718_v38 = vld [vmem:[#allocation7 + $0xe0] sm:$0xff]   ;;  %v2721_v40 = vld [vmem:[#allocation7 + $0x128] sm:$0xff]   ;;  %p2864_p3 = por %p2863_p13, %p2862_p11 }
  0x93   : > { %2389 = vmatpush3.bf16.msra.mxu0 %v2686_v4  ;;  %2188 = vmatprep.subr.bf16.mxu1 %v2709_v28  ;;  %v2720_v39 = vld [vmem:[#allocation7 + $0x30] sm:$0xff]   ;;  %v2723_v41 = vld [vmem:[#allocation7 + $0x78] sm:$0xff]   ;;  %v2722_v42 = vld [vmem:[#allocation7 + $0xe8] sm:$0xff]  }
  0x94   : > { %2390 = vmatprep.subr.bf16.mxu0 %v2964_v0  ;;  %v2724_v43 = vld [vmem:[#allocation7 + $0x38] sm:$0xff]   ;;  %v2725_v44 = vld [vmem:[#allocation7 + $0x130] sm:$0xff]   ;;  %v3245_v48 = vld [vmem:[#allocation7 + $0x140] sm:$0xff]   ;;  %p2865_p7 = pnand %p2864_p3, %p2858_p6 }
  0x95   : > { %v2726_v45 = vld [vmem:[#allocation7 + $0xf0] sm:$0xff]   ;;  %v2727_v46 = vld [vmem:[#allocation7 + $0x138] sm:$0xff]   ;;  %v2731_v49 = vld [vmem:[#allocation7 + $0x1c0] sm:$0xff]  }
  0x96   : > { %2189 = vmatpush3.bf16.msra.mxu1 %v2710_v30  ;;  %v2728_v47 = vld [vmem:[#allocation7 + $0xf8] sm:$0xff]   ;;  %v3251_v50 = vld [vmem:[%s3528_s3] ss:$0 sm:$0xff] }
  0x97   : > { %2391 = vmatpush3.bf16.msra.mxu0 %v402_v6  ;;  %2190 = vmatprep.subr.bf16.mxu1 %v2713_v32  ;;  %v2734_v30 = vld [vmem:[#allocation7 + $0x1c8] sm:$0xff]  }
  0x98   : > { %2250 = vmatprep.subr.bf16.mxu0 %v2697_v7 }
  0x9a   : > { %2393 = vmatmul.mubr.msk.bf16.vlgmr.msra.gmra.mrb[0].mxu0 %vm372_vm2, %v2688_v8  ;;  %2191 = vmatpush3.bf16.msra.mxu1 %v2714_v34 }
  0x9b   : > { %2396 = vmatprep.mubr.msk.bf16.mxu0 %vm2965_vm0, %v2964_v0  ;;  %2251 = vmatpush3.bf16.msra.mxu0 %v2698_v9 }
  0x9c   : > { %2252 = vmatprep.subr.bf16.mxu0 %v2699_v10  ;;  %2192 = vmatprep.subr.bf16.mxu1 %v2717_v36  ;;  %v2735_v36 = vld [vmem:[#allocation7 + $0x188] sm:$0xff]  }
  0x9e   : > { %2193 = vmatpush3.bf16.msra.mxu1 %v2718_v38 }
  0x9f   : > { %2253 = vmatpush3.bf16.msra.mxu0 %v2700_v11  ;;  %2194 = vmatprep.subr.bf16.mxu1 %v2721_v40 }
  0xa0   : > { %2254 = vmatprep.subr.bf16.mxu0 %v2703_v21 }
  0xa2   : > { %2397 = vmatmul.mubr.msk.bf16.gmra.mrb[4].mxu0 %vm372_vm2, %v2689_v12  ;;  %2195 = vmatpush3.bf16.msra.mxu1 %v2722_v42  ;;  %v2736_v42 = vld [vmem:[#allocation7 + $0x1d0] sm:$0xff]  }
  0xa3   : > { %2400 = vmatprep.mubr.msk.bf16.mxu0 %vm2965_vm0, %v2964_v0  ;;  %2255 = vmatpush3.bf16.msra.mxu0 %v2704_v23 }
  0xa4   : > { %2256 = vmatprep.subr.bf16.mxu0 %v2707_v25  ;;  %2196 = vmatprep.subr.bf16.mxu1 %v2725_v44  ;;  %v2732_v25 = vld [vmem:[#allocation7 + $0x180] sm:$0xff]  }
  0xa6   : > { %2197 = vmatpush3.bf16.msra.mxu1 %v2726_v45 }
  0xa7   : > { %2257 = vmatpush3.bf16.msra.mxu0 %v2708_v27  ;;  %2198 = vmatprep.subr.bf16.mxu1 %v2727_v46 }
  0xa8   : > { %2258 = vmatprep.subr.bf16.mxu0 %v2711_v29 }
  0xaa   : > { %2401 = vmatmul.mubr.msk.bf16.gmra.mrb[8].mxu0 %vm372_vm2, %v2690_v13  ;;  %2199 = vmatpush3.bf16.msra.mxu1 %v2728_v47  ;;  %v2738_v47 = vld [vmem:[#allocation7 + $0x190] sm:$0xff]  }
  0xab   : > { %2404 = vmatprep.mubr.msk.bf16.mxu0 %vm2965_vm0, %v2964_v0  ;;  %2259 = vmatpush3.bf16.msra.mxu0 %v2712_v31 }
  0xac   : > { %2260 = vmatprep.subr.bf16.mxu0 %v2715_v33  ;;  %2428 = vmatprep.subr.bf16.mxu1 %v3245_v48 }
  0xaf   : > { %2261 = vmatpush3.bf16.msra.mxu0 %v2716_v35 }
  0xb0   : > { %2262 = vmatprep.subr.bf16.mxu0 %v2719_v37 }
  0xb2   : > { %2405 = vmatmul.mubr.msk.bf16.gmra.mrb[12].mxu0 %vm372_vm2, %v2691_v14 }
  0xb3   : > { %2408 = vmatprep.mubr.msk.bf16.mxu0 %vm2965_vm0, %v2964_v0  ;;  %2263 = vmatpush3.bf16.msra.mxu0 %v2720_v39 }
  0xb4   : > { %2264 = vmatprep.subr.bf16.mxu0 %v2723_v41 }
  0xb7   : > { %2265 = vmatpush3.bf16.msra.mxu0 %v2724_v43 }
  0xb8   : > { %2316 = vmatprep.subr.bf16.mxu0 %v2731_v49 }
  0xba   : > { %2409 = vmatmul.mubr.msk.bf16.gmra.mrb[16].mxu0 %vm372_vm2, %v2692_v15 }
  0xbb   : > { %2412 = vmatprep.mubr.msk.bf16.mxu0 %vm2965_vm0, %v2964_v0 }
  0xc2   : > { %2413 = vmatmul.mubr.msk.bf16.gmra.mrb[20].mxu0 %vm372_vm2, %v2693_v16 }
  0xc3   : > { %2416 = vmatprep.mubr.msk.bf16.mxu0 %vm2965_vm0, %v2964_v0 }
  0xca   : > { %2417 = vmatmul.mubr.msk.bf16.gmra.mrb[24].mxu0 %vm372_vm2, %v2694_v17 }
  0xcb   : > { %2420 = vmatprep.mubr.msk.bf16.mxu0 %vm2965_vm0, %v2964_v0 }
  0xd2   : > { %2421 = vmatmul.mubr.msk.bf16.gmra.mrb[28].mxu0 %vm372_vm2, %v2695_v18 }
  0xd3   : > { %2424 = vmatprep.mubr.msk.bf16.mxu0 %vm2965_vm0, %v2964_v0 }
  0xda   : > { %2425 = vmatmul.mubr.msk.bf16.gmra.mrb[32].mxu0 %vm372_vm2, %v2696_v19 }
 0x16d   : > { %v438_v51 = vpop.f32.mrb[0].mxu0 }
 0x16e   : > { %v439_v52 = vadd.f32 %v3251_v50, %v438_v51  ;;  %v2394_v53 = vpop.f32.mrb[1].mxu0 }
 0x16f   : > { %v441_v54 = vpop.f32.mrb[2].mxu0 }
 0x170   : > { %v509_v55 = vmul.f32 0.01, %v439_v52  ;;  %v442_v56 = vadd.f32 %v3251_v50, %v441_v54  ;;  %v2395_v57 = vpop.f32.mrb[3].mxu0  ;;  %v2730_v54 = vld [vmem:[#allocation7 + $0x148] sm:$0xff]  }
 0x172   : > { %v510_v58 = vmul.f32 0.01, %v442_v56  ;;  %v527_v59 = vmax.f32 %v439_v52, %v509_v55  ;;  %v2739_v55 = vld [vmem:[#allocation7 + $0x1d8] sm:$0xff]  }
 0x174   : > { %v528_v60 = vmax.f32 %v442_v56, %v510_v58 }
 0x175   : > { %v446_v61 = vpop.f32.mrb[4].mxu0 }
 0x176   : > { %v545_v62 = vpack.c.bf16 %v528_v60, %v527_v59  ;;  %v447_v63 = vadd.f32 %v3251_v50, %v446_v61  ;;  %v2398_v0 = vpop.f32.mrb[5].mxu0  ;;  %v2733_v61 = vld [vmem:[#allocation7 + $0x150] sm:$0xff]  }
 0x177   : > { %v449_v1 = vpop.f32.mrb[6].mxu0 }
 0x178   : > { %v511_v2 = vmul.f32 0.01, %v447_v63  ;;  %v450_v3 = vadd.f32 %v3251_v50, %v449_v1  ;;  %v2399_v4 = vpop.f32.mrb[7].mxu0  ;;  %v558_v6 = vshll.u32 %v545_v62, 16  ;;  %v556_v18 = vshrl.u32 %v545_v62, 16 }
 0x179   : > { %v641_v21 = vrot.slane %v545_v62, 1  ;;  %v2742_v4 = vld [vmem:[#allocation7 + $0x1e0] sm:$0xff]  }
 0x17a   : > { %v512_v5 = vmul.f32 0.01, %v450_v3  ;;  %v529_v7 = vmax.f32 %v447_v63, %v511_v2  ;;  %v560_v13 = vrot.slane %v558_v6, 1 }
 0x17c   : > { %v530_v8 = vmax.f32 %v450_v3, %v512_v5  ;;  %v561_v23 = vor.u32 %v560_v13, %v556_v18  ;;  %v2737_v13 = vld [vmem:[#allocation7 + $0x158] sm:$0xff]  }
 0x17d   : > { %v454_v9 = vpop.f32.mrb[8].mxu0 }
 0x17e   : > { %v546_v10 = vpack.c.bf16 %v530_v8, %v529_v7  ;;  %v455_v11 = vadd.f32 %v3251_v50, %v454_v9  ;;  %v2402_v12 = vpop.f32.mrb[9].mxu0  ;;  %v2743_v8 = vld [vmem:[#allocation7 + $0x1a0] sm:$0xff]  }
 0x17f   : > { %v457_v14 = vpop.f32.mrb[10].mxu0 }
 0x180   : > { %v513_v15 = vmul.f32 0.01, %v455_v11  ;;  %v458_v16 = vadd.f32 %v3251_v50, %v457_v14  ;;  %v2403_v17 = vpop.f32.mrb[11].mxu0  ;;  %v563_v19 = vshll.u32 %v546_v10, 16  ;;  %v642_v20 = vrot.slane %v546_v10, 1  ;;  %v2744_v14 = vld [vmem:[#allocation7 + $0x1e8] sm:$0xff]  }
 0x181   : > { %v567_v40 = vshrl.u32 %v546_v10, 16 }
 0x182   : > { %v514_v22 = vmul.f32 0.01, %v458_v16  ;;  %v565_v24 = vrot.slane %v563_v19, 1  ;;  %v3260_v26 = vsel %vm640_vm3, %v641_v21, %v642_v20  ;;  %v531_v27 = vmax.f32 %v455_v11, %v513_v15  ;;  %v2746_v21 = vld [vmem:[#allocation7 + $0x1a8] sm:$0xff]  }
 0x184   : > { %v532_v28 = vmax.f32 %v458_v16, %v514_v22  ;;  %v566_v29 = vsel %vm554_vm4, %v561_v23, %v565_v24  ;;  %v569_v45 = vor.u32 %v567_v40, %v565_v24  ;;  %v2750_v40 = vld [vmem:[#allocation7 + $0x1f8] sm:$0xff]  }
 0x185   : > { %v462_v31 = vpop.f32.mrb[12].mxu0  ;;  %1245 = vmatprep.mubr.bf16.mxu0 %v566_v29 }
 0x186   : > { %v3263_v32 = vpack.c.bf16 %v532_v28, %v531_v27  ;;  %v463_v33 = vadd.f32 %v3251_v50, %v462_v31  ;;  %v2406_v34 = vpop.f32.mrb[13].mxu0  ;;  %1246 = vmatmul.mubr.bf16.vlgmr.msra.gmra.mrb[36].mxu0 %v545_v62  ;;  %v2740_v62 = vld [vmem:[#allocation7 + $0x198] sm:$0xff]   ;;  %v2747_v28 = vld [vmem:[#allocation7 + $0x1f0] sm:$0xff]  }
 0x187   : > { %v465_v35 = vpop.f32.mrb[14].mxu0  ;;  %2317 = vmatpush3.bf16.msra.mxu0 %v2732_v25  ;;  %v2748_v34 = vld [vmem:[#allocation7 + $0x1b0] sm:$0xff]  }
 0x188   : > { %v515_v37 = vmul.f32 0.01, %v463_v33  ;;  %v466_v38 = vadd.f32 %v3251_v50, %v465_v35  ;;  %v2407_v39 = vpop.f32.mrb[15].mxu0  ;;  %v571_v41 = vshll.u32 %v3263_v32, 16  ;;  %2318 = vmatprep.subr.bf16.mxu0 %v2734_v30  ;;  %v644_v43 = vrot.slane %v3263_v32, 1 }
 0x189   : > { %v575_v2 = vshrl.u32 %v3263_v32, 16  ;;  %v2745_v39 = vld [vmem:[#allocation7 + $0x168] sm:$0xff]  }
 0x18a   : > { %v516_v44 = vmul.f32 0.01, %v466_v38  ;;  %v573_v46 = vrot.slane %v571_v41, 1  ;;  %v3270_v49 = vsel %vm640_vm3, %v642_v20, %v644_v43  ;;  %v533_v51 = vmax.f32 %v463_v33, %v515_v37  ;;  %v2741_v20 = vld [vmem:[#allocation7 + $0x160] sm:$0xff]  }
 0x18b   : > { %2319 = vmatpush3.bf16.msra.mxu0 %v2735_v36 }
 0x18c   : > { %v534_v52 = vmax.f32 %v466_v38, %v516_v44  ;;  %v574_v53 = vsel %vm554_vm4, %v569_v45, %v573_v46  ;;  %2320 = vmatprep.subr.bf16.mxu0 %v2736_v42  ;;  %v577_v7 = vor.u32 %v575_v2, %v573_v46  ;;  %v2751_v46 = vld [vmem:[#allocation7 + $0x1b8] sm:$0xff]  }
 0x18d   : > { %v470_v56 = vpop.f32.mrb[16].mxu0  ;;  %939 = vmatprep.mubr.bf16.mxu1 %v574_v53  ;;  %1253 = vmatprep.mubr.bf16.mxu0 %v574_v53 }
 0x18e   : > { %v3273_v57 = vpack.c.bf16 %v534_v52, %v533_v51  ;;  %v471_v58 = vadd.f32 %v3251_v50, %v470_v56  ;;  %v2410_v59 = vpop.f32.mrb[17].mxu0  ;;  %940 = vmatmul.mubr.bf16.vlgmr.msra.gmra.mrb[0].mxu1 %v546_v10  ;;  %1254 = vmatmul.mubr.bf16.gmra.mrb[40].mxu0 %v546_v10 }
 0x18f   : > { %2429 = vmatpush3.bf16.msra.mxu1 %v3245_v48  ;;  %v473_v60 = vpop.f32.mrb[18].mxu0  ;;  %2321 = vmatpush3.bf16.msra.mxu0 %v2738_v47 }
 0x190   : > { %v517_v63 = vmul.f32 0.01, %v471_v58  ;;  %v474_v0 = vadd.f32 %v3251_v50, %v473_v60  ;;  %v2411_v1 = vpop.f32.mrb[19].mxu0  ;;  %2430 = vmatprep.subr.bf16.mxu1 %v2730_v54  ;;  %v579_v3 = vshll.u32 %v3273_v57, 16  ;;  %2322 = vmatprep.subr.bf16.mxu0 %v2739_v55  ;;  %v646_v5 = vrot.slane %v3273_v57, 1  ;;  %v2749_v55 = vld [vmem:[#allocation7 + $0x170] sm:$0xff]  }
 0x191   : > { %v583_v25 = vshrl.u32 %v3273_v57, 16  ;;  %v2752_v1 = vld [vmem:[#allocation7 + $0x178] sm:$0xff]  }
 0x192   : > { %v518_v6 = vmul.f32 0.01, %v474_v0  ;;  %v581_v48 = vrot.slane %v579_v3, 1  ;;  %v3282_v9 = vsel %vm640_vm3, %v644_v43, %v646_v5  ;;  %v535_v10 = vmax.f32 %v471_v58, %v517_v63 }
 0x193   : > { %2431 = vmatpush3.bf16.msra.mxu1 %v2730_v54  ;;  %2323 = vmatpush3.bf16.msra.mxu0 %v2740_v62 }
 0x194   : > { %v536_v11 = vmax.f32 %v474_v0, %v518_v6  ;;  %v3285_v12 = vsel %vm554_vm4, %v577_v7, %v581_v48  ;;  %2432 = vmatprep.subr.bf16.mxu1 %v2733_v61  ;;  %2324 = vmatprep.subr.bf16.mxu0 %v2742_v4  ;;  %v585_v31 = vor.u32 %v583_v25, %v581_v48 }
 0x195   : > { %v478_v15 = vpop.f32.mrb[20].mxu0  ;;  %947 = vmatprep.mubr.bf16.mxu1 %v3285_v12  ;;  %1261 = vmatprep.mubr.bf16.mxu0 %v3285_v12 }
 0x196   : > { %v3289_v16 = vpack.c.bf16 %v536_v11, %v535_v10  ;;  %v479_v17 = vadd.f32 %v3251_v50, %v478_v15  ;;  %v2414_v18 = vpop.f32.mrb[21].mxu0  ;;  %948 = vmatmul.mubr.bf16.gmra.mrb[4].mxu1 %v3263_v32  ;;  %1262 = vmatmul.mubr.bf16.gmra.mrb[44].mxu0 %v3263_v32 }
 0x197   : > { %v481_v19 = vpop.f32.mrb[22].mxu0  ;;  %2433 = vmatpush3.bf16.msra.mxu1 %v2733_v61  ;;  %2325 = vmatpush3.bf16.msra.mxu0 %v2743_v8 }
 0x198   : > { %v519_v22 = vmul.f32 0.01, %v479_v17  ;;  %v482_v23 = vadd.f32 %v3251_v50, %v481_v19  ;;  %v2415_v24 = vpop.f32.mrb[23].mxu0  ;;  %v587_v27 = vshll.u32 %v3289_v16, 16  ;;  %2434 = vmatprep.subr.bf16.mxu1 %v2737_v13  ;;  %2326 = vmatprep.subr.bf16.mxu0 %v2744_v14  ;;  %v648_v29 = vrot.slane %v3289_v16, 1 }
 0x199   : > { %v591_v53 = vshrl.u32 %v3289_v16, 16 }
 0x19a   : > { %v520_v30 = vmul.f32 0.01, %v482_v23  ;;  %v589_v33 = vrot.slane %v587_v27, 1  ;;  %v3299_v35 = vsel %vm640_vm3, %v646_v5, %v648_v29  ;;  %v537_v36 = vmax.f32 %v479_v17, %v519_v22 }
 0x19b   : > { %2435 = vmatpush3.bf16.msra.mxu1 %v2737_v13  ;;  %2327 = vmatpush3.bf16.msra.mxu0 %v2746_v21  ;;  %v2753_v13 = vld [vmem:[#allocation7 + $0x80] sm:$0xff]  }
 0x19c   : > { %v538_v37 = vmax.f32 %v482_v23, %v520_v30  ;;  %v3302_v38 = vsel %vm554_vm4, %v585_v31, %v589_v33  ;;  %2436 = vmatprep.subr.bf16.mxu1 %v2741_v20  ;;  %2328 = vmatprep.subr.bf16.mxu0 %v2747_v28  ;;  %v593_v59 = vor.u32 %v591_v53, %v589_v33 }
 0x19d   : > { %v486_v41 = vpop.f32.mrb[24].mxu0  ;;  %955 = vmatprep.mubr.bf16.mxu1 %v3302_v38  ;;  %1269 = vmatprep.mubr.bf16.mxu0 %v3302_v38 }
 0x19e   : > { %v3306_v42 = vpack.c.bf16 %v538_v37, %v537_v36  ;;  %v487_v43 = vadd.f32 %v3251_v50, %v486_v41  ;;  %v2418_v44 = vpop.f32.mrb[25].mxu0  ;;  %956 = vmatmul.mubr.bf16.gmra.mrb[8].mxu1 %v3273_v57  ;;  %1270 = vmatmul.mubr.bf16.gmra.mrb[48].mxu0 %v3273_v57 }
 0x19f   : > { %v489_v45 = vpop.f32.mrb[26].mxu0  ;;  %2437 = vmatpush3.bf16.msra.mxu1 %v2741_v20  ;;  %2329 = vmatpush3.bf16.msra.mxu0 %v2748_v34 }
 0x1a0   : > { %v521_v47 = vmul.f32 0.01, %v487_v43  ;;  %v490_v51 = vadd.f32 %v3251_v50, %v489_v45  ;;  %v2419_v52 = vpop.f32.mrb[27].mxu0  ;;  %v595_v54 = vshll.u32 %v3306_v42, 16  ;;  %2438 = vmatprep.subr.bf16.mxu1 %v2745_v39  ;;  %2330 = vmatprep.subr.bf16.mxu0 %v2750_v40  ;;  %v650_v56 = vrot.slane %v3306_v42, 1 }
 0x1a1   : > { %v599_v10 = vshrl.u32 %v3306_v42, 16 }
 0x1a2   : > { %v522_v58 = vmul.f32 0.01, %v490_v51  ;;  %v597_v60 = vrot.slane %v595_v54, 1  ;;  %v3316_v61 = vsel %vm640_vm3, %v648_v29, %v650_v56  ;;  %v539_v62 = vmax.f32 %v487_v43, %v521_v47  ;;  %v2754_v54 = vld [vmem:[#allocation7 + $0x88] sm:$0xff]  }
 0x1a3   : > { %2439 = vmatpush3.bf16.msra.mxu1 %v2745_v39  ;;  %2331 = vmatpush3.bf16.msra.mxu0 %v2751_v46 }
 0x1a4   : > { %v540_v63 = vmax.f32 %v490_v51, %v522_v58  ;;  %v3319_v0 = vsel %vm554_vm4, %v593_v59, %v597_v60  ;;  %2440 = vmatprep.subr.bf16.mxu1 %v2749_v55  ;;  %v601_v17 = vor.u32 %v599_v10, %v597_v60  ;;  %v2759_v58 = vld [vmem:[#allocation7 + $0xb0] sm:$0xff]   ;;  %v2761_v59 = vld [vmem:[#allocation7 + $0x200] sm:$0xff]   ;;  %v2762_v60 = vld [vmem:[#allocation7 + $0x208] sm:$0xff]  }
 0x1a5   : > { %v494_v2 = vpop.f32.mrb[28].mxu0  ;;  %963 = vmatprep.mubr.bf16.mxu1 %v3319_v0  ;;  %1277 = vmatprep.mubr.bf16.mxu0 %v3319_v0 }
 0x1a6   : > { %v3323_v3 = vpack.c.bf16 %v540_v63, %v539_v62  ;;  %v495_v4 = vadd.f32 %v3251_v50, %v494_v2  ;;  %v2422_v5 = vpop.f32.mrb[29].mxu0  ;;  %964 = vmatmul.mubr.bf16.gmra.mrb[12].mxu1 %v3289_v16  ;;  %1278 = vmatmul.mubr.bf16.gmra.mrb[52].mxu0 %v3289_v16  ;;  %v2765_v62 = vld [vmem:[#allocation7 + $0x220] sm:$0xff]   ;;  %v2767_v63 = vld [vmem:[#allocation7 + $0x230] sm:$0xff]  }
 0x1a7   : > { %v497_v6 = vpop.f32.mrb[30].mxu0  ;;  %2441 = vmatpush3.bf16.msra.mxu1 %v2749_v55 }
 0x1a8   : > { %v523_v7 = vmul.f32 0.01, %v495_v4  ;;  %v498_v48 = vadd.f32 %v3251_v50, %v497_v6  ;;  %v2423_v8 = vpop.f32.mrb[31].mxu0  ;;  %v603_v11 = vshll.u32 %v3323_v3, 16  ;;  %2442 = vmatprep.subr.bf16.mxu1 %v2752_v1  ;;  %v652_v14 = vrot.slane %v3323_v3, 1 }
 0x1a9   : > { %v607_v29 = vshrl.u32 %v3323_v3, 16 }
 0x1aa   : > { %v524_v15 = vmul.f32 0.01, %v498_v48  ;;  %v605_v18 = vrot.slane %v603_v11, 1  ;;  %v3333_v19 = vsel %vm640_vm3, %v650_v56, %v652_v14  ;;  %v541_v20 = vmax.f32 %v495_v4, %v523_v7  ;;  %v2758_v56 = vld [vmem:[#allocation7 + $0xa8] sm:$0xff]  }
 0x1ab   : > { %2443 = vmatpush3.bf16.msra.mxu1 %v2752_v1 }
 0x1ac   : > { %v542_v21 = vmax.f32 %v498_v48, %v524_v15  ;;  %v606_v22 = vsel %vm554_vm4, %v601_v17, %v605_v18  ;;  %2456 = vmatprep.subr.bf16.mxu1 %v2753_v13  ;;  %v609_v37 = vor.u32 %v607_v29, %v605_v18 }
 0x1ad   : > { %v502_v23 = vpop.f32.mrb[32].mxu0  ;;  %971 = vmatprep.mubr.bf16.mxu1 %v606_v22  ;;  %1285 = vmatprep.mubr.bf16.mxu0 %v606_v22 }
 0x1ae   : > { %v3336_v24 = vpack.c.bf16 %v542_v21, %v541_v20  ;;  %v503_v25 = vadd.f32 %v3251_v50, %v502_v23  ;;  %v2426_v27 = vpop.f32.mrb[33].mxu0  ;;  %972 = vmatmul.mubr.bf16.gmra.mrb[16].mxu1 %v3306_v42  ;;  %1286 = vmatmul.mubr.bf16.gmra.mrb[56].mxu0 %v3306_v42 }
 0x1af   : > { %v505_v28 = vpop.f32.mrb[34].mxu0  ;;  %1600 = vmatprep.mubr.bf16.mxu0 %v3285_v12 }
 0x1b0   : > { %v525_v30 = vmul.f32 0.01, %v503_v25  ;;  %v506_v31 = vadd.f32 %v3251_v50, %v505_v28  ;;  %v611_v33 = vshll.u32 %v3336_v24, 16  ;;  %v654_v34 = vrot.slane %v3336_v24, 1  ;;  %v2427_v36 = vpop.f32.mrb[35].mxu0 }
 0x1b1   : > { %v615_v46 = vshrl.u32 %v3336_v24, 16 }
 0x1b2   : > { %v543_v39 = vmax.f32 %v503_v25, %v525_v30  ;;  %v526_v40 = vmul.f32 0.01, %v506_v31  ;;  %v613_v41 = vrot.slane %v611_v33, 1  ;;  %v3347_v43 = vsel %vm640_vm3, %v652_v14, %v654_v34 }
 0x1b4   : > { %v544_v44 = vmax.f32 %v506_v31, %v526_v40  ;;  %v614_v12 = vsel %vm554_vm4, %v609_v37, %v613_v41  ;;  %v617_v51 = vor.u32 %v615_v46, %v613_v41 }
 0x1b5   : > { %979 = vmatprep.mubr.bf16.mxu1 %v614_v12 }
 0x1b6   : > { %v553_v45 = vpack.c.bf16 %v544_v44, %v543_v39  ;;  %980 = vmatmul.mubr.bf16.gmra.mrb[20].mxu1 %v3323_v3  ;;  %1601 = vmatmul.mubr.bf16.vlgmr.msra.gmra.mrb[60].mxu0 %v3263_v32  ;;  %v2755_v32 = vld [vmem:[#allocation7 + $0x90] sm:$0xff]  }
 0x1b7   : > { %2444 = vmatprep.mubr.bf16.mxu1 %v3270_v49  ;;  %1608 = vmatprep.mubr.bf16.mxu0 %v3302_v38  ;;  %v2756_v38 = vld [vmem:[#allocation7 + $0x98] sm:$0xff]  }
 0x1b8   : > { %v619_v50 = vshll.u32 %v553_v45, 16  ;;  %v656_v47 = vrot.slane %v553_v45, 1 }
 0x1ba   : > { %v621_v52 = vrot.slane %v619_v50, 1  ;;  %v3356_v53 = vsel %vm640_vm3, %v654_v34, %v656_v47 }
 0x1bc   : > { %v622_v55 = vsel %vm554_vm4, %v617_v51, %v621_v52 }
 0x1be   : > { %2445 = vmatmul.mubr.bf16.vlgmr.msra.gmra.mrb[24].mxu1 %v3282_v9  ;;  %1609 = vmatmul.mubr.bf16.gmra.mrb[64].mxu0 %v3273_v57  ;;  %v2757_v57 = vld [vmem:[#allocation7 + $0xa0] sm:$0xff]  }
 0x1bf   : > { %2457 = vmatpush3.bf16.msra.mxu1 %v2753_v13  ;;  %2448 = vmatprep.mubr.bf16.mxu1 %v3299_v35 }
 0x1c0   : > { %1616 = vmatprep.mubr.bf16.mxu0 %v3319_v0  ;;  %2458 = vmatprep.subr.bf16.mxu1 %v2754_v54  ;;  %v2768_v0 = vld [vmem:[#allocation7 + $0x238] sm:$0xff]  }
 0x1c3   : > { %2459 = vmatpush3.bf16.msra.mxu1 %v2754_v54 }
 0x1c4   : > { %2460 = vmatprep.subr.bf16.mxu1 %v2755_v32 }
 0x1c6   : > { %2449 = vmatmul.mubr.bf16.gmra.mrb[28].mxu1 %v3316_v61  ;;  %1617 = vmatmul.mubr.bf16.gmra.mrb[68].mxu0 %v3289_v16  ;;  %v2760_v16 = vld [vmem:[#allocation7 + $0xb8] sm:$0xff]  }
 0x1c7   : > { %2461 = vmatpush3.bf16.msra.mxu1 %v2755_v32  ;;  %2452 = vmatprep.mubr.bf16.mxu1 %v3333_v19 }
 0x1c8   : > { %1624 = vmatprep.mubr.bf16.mxu0 %v606_v22  ;;  %2462 = vmatprep.subr.bf16.mxu1 %v2756_v38 }
 0x1cb   : > { %2463 = vmatpush3.bf16.msra.mxu1 %v2756_v38 }
 0x1cc   : > { %2464 = vmatprep.subr.bf16.mxu1 %v2757_v57 }
 0x1ce   : > { %2453 = vmatmul.mubr.bf16.gmra.mrb[32].mxu1 %v3347_v43  ;;  %1625 = vmatmul.mubr.bf16.gmra.mrb[72].mxu0 %v3306_v42  ;;  %v2764_v42 = vld [vmem:[#allocation7 + $0x218] sm:$0xff]  }
 0x1cf   : > { %2465 = vmatpush3.bf16.msra.mxu1 %v2757_v57  ;;  %2472 = vmatprep.mubr.bf16.mxu1 %v3260_v26  ;;  %v2763_v26 = vld [vmem:[#allocation7 + $0x210] sm:$0xff]  }
 0x1d0   : > { %1632 = vmatprep.mubr.bf16.mxu0 %v614_v12  ;;  %2466 = vmatprep.subr.bf16.mxu1 %v2758_v56 }
 0x1d3   : > { %2467 = vmatpush3.bf16.msra.mxu1 %v2758_v56 }
 0x1d4   : > { %2468 = vmatprep.subr.bf16.mxu1 %v2759_v58 }
 0x1d6   : > { %1633 = vmatmul.mubr.bf16.gmra.mrb[76].mxu0 %v3323_v3 }
 0x1d7   : > { %2469 = vmatpush3.bf16.msra.mxu1 %v2759_v58  ;;  %1640 = vmatprep.mubr.bf16.mxu0 %v622_v55 }
 0x1d8   : > { %2470 = vmatprep.subr.bf16.mxu1 %v2760_v16 }
 0x1db   : > { %2471 = vmatpush3.bf16.msra.mxu1 %v2760_v16 }
 0x1dc   : > { %2484 = vmatprep.subr.bf16.mxu1 %v2761_v59 }
 0x1de   : > { %2473 = vmatmul.mubr.bf16.vlgmr.msra.gmra.mrb[24].mxu1 %v3270_v49  ;;  %1641 = vmatmul.mubr.bf16.gmra.mrb[80].mxu0 %v3336_v24  ;;  %v2766_v49 = vld [vmem:[#allocation7 + $0x228] sm:$0xff]  }
 0x1df   : > { %2476 = vmatprep.mubr.bf16.mxu1 %v3282_v9  ;;  %2485 = vmatpush3.bf16.msra.mxu1 %v2761_v59 }
 0x1e0   : > { %2486 = vmatprep.subr.bf16.mxu1 %v2762_v60 }
 0x1e3   : > { %2487 = vmatpush3.bf16.msra.mxu1 %v2762_v60 }
 0x1e4   : > { %2488 = vmatprep.subr.bf16.mxu1 %v2763_v26 }
 0x1e6   : > { %2477 = vmatmul.mubr.bf16.gmra.mrb[28].mxu1 %v3299_v35 }
 0x1e7   : > { %2480 = vmatprep.mubr.bf16.mxu1 %v3316_v61  ;;  %2489 = vmatpush3.bf16.msra.mxu1 %v2763_v26 }
 0x1e8   : > { %2490 = vmatprep.subr.bf16.mxu1 %v2764_v42 }
 0x1eb   : > { %2491 = vmatpush3.bf16.msra.mxu1 %v2764_v42 }
 0x1ec   : > { %2492 = vmatprep.subr.bf16.mxu1 %v2765_v62 }
 0x1ee   : > { %2481 = vmatmul.mubr.bf16.gmra.mrb[32].mxu1 %v3333_v19 }
 0x1ef   : > { %2493 = vmatpush3.bf16.msra.mxu1 %v2765_v62  ;;  %2500 = vmatprep.mubr.bf16.mxu1 %v3282_v9 }
 0x1f0   : > { %2494 = vmatprep.subr.bf16.mxu1 %v2766_v49 }
 0x1f3   : > { %2495 = vmatpush3.bf16.msra.mxu1 %v2766_v49 }
 0x1f4   : > { %2496 = vmatprep.subr.bf16.mxu1 %v2767_v63 }
 0x1f7   : > { %2497 = vmatpush3.bf16.msra.mxu1 %v2767_v63 }
 0x1f8   : > { %2498 = vmatprep.subr.bf16.mxu1 %v2768_v0 }
 0x1fb   : > { %2499 = vmatpush3.bf16.msra.mxu1 %v2768_v0 }
 0x1fe   : > { %2501 = vmatmul.mubr.bf16.vlgmr.msra.gmra.mrb[24].mxu1 %v3299_v35 }
 0x1ff   : > { %2504 = vmatprep.mubr.bf16.mxu1 %v3316_v61 }
 0x206   : > { %2505 = vmatmul.mubr.bf16.gmra.mrb[28].mxu1 %v3333_v19 }
 0x207   : > { %2508 = vmatprep.mubr.bf16.mxu1 %v3347_v43 }
 0x20e   : > { %2509 = vmatmul.mubr.bf16.gmra.mrb[32].mxu1 %v3356_v53 }
 0x259   : > { %v2266_v1 = vpop.f32.mrb[36].mxu0 }
 0x25a   : > { %v2267_v9 = vpop.f32.mrb[37].mxu0 }
 0x25b   : > { %v2268_v2 = vadd.f32 %v2267_v9, %v2266_v1  ;;  %v2269_v3 = vpop.f32.mrb[38].mxu0 }
 0x25c   : > { %v2270_v4 = vpop.f32.mrb[39].mxu0 }
 0x25d   : > { %v2271_v5 = vadd.f32 %v2270_v4, %v2269_v3 }
 0x261   : > { %v2200_v6 = vpop.f32.mrb[0].mxu1  ;;  %v2272_v7 = vpop.f32.mrb[40].mxu0 }
 0x262   : > { %v2201_v48 = vpop.f32.mrb[1].mxu1  ;;  %v2273_v8 = vpop.f32.mrb[41].mxu0 }
 0x263   : > { %v2202_v10 = vadd.f32 %v2201_v48, %v2200_v6  ;;  %v2274_v35 = vadd.f32 %v2273_v8, %v2272_v7  ;;  %v2203_v11 = vpop.f32.mrb[2].mxu1  ;;  %v2275_v61 = vpop.f32.mrb[42].mxu0 }
 0x264   : > { %v2204_v13 = vpop.f32.mrb[3].mxu1  ;;  %v2276_v14 = vpop.f32.mrb[43].mxu0 }
 0x265   : > { %v3382_v15 = vadd.f32 %v2268_v2, %v2202_v10  ;;  %v2205_v17 = vadd.f32 %v2204_v13, %v2203_v11  ;;  %v2277_v18 = vadd.f32 %v2276_v14, %v2275_v61 }
 0x267   : > { %v3384_v19 = vadd.f32 %v2271_v5, %v2205_v17 }
 0x269   : > { %v2206_v20 = vpop.f32.mrb[4].mxu1  ;;  %v2278_v21 = vpop.f32.mrb[44].mxu0 }
 0x26a   : > { %v2207_v22 = vpop.f32.mrb[5].mxu1  ;;  %v2279_v23 = vpop.f32.mrb[45].mxu0 }
 0x26b   : > { %v2208_v24 = vadd.f32 %v2207_v22, %v2206_v20  ;;  %v2280_v25 = vadd.f32 %v2279_v23, %v2278_v21  ;;  %v2209_v27 = vpop.f32.mrb[6].mxu1  ;;  %v2281_v28 = vpop.f32.mrb[46].mxu0 }
 0x26c   : > { %v2210_v29 = vpop.f32.mrb[7].mxu1  ;;  %v2282_v30 = vpop.f32.mrb[47].mxu0 }
 0x26d   : > { %v3386_v31 = vadd.f32 %v2274_v35, %v2208_v24  ;;  %v2211_v33 = vadd.f32 %v2210_v29, %v2209_v27  ;;  %v2283_v34 = vadd.f32 %v2282_v30, %v2281_v28 }
 0x26f   : > { %v3388_v36 = vadd.f32 %v2277_v18, %v2211_v33 }
 0x271   : > { %v2212_v37 = vpop.f32.mrb[8].mxu1  ;;  %v2284_v39 = vpop.f32.mrb[48].mxu0 }
 0x272   : > { %v2213_v40 = vpop.f32.mrb[9].mxu1  ;;  %v2285_v41 = vpop.f32.mrb[49].mxu0 }
 0x273   : > { %v2214_v43 = vadd.f32 %v2213_v40, %v2212_v37  ;;  %v2286_v44 = vadd.f32 %v2285_v41, %v2284_v39  ;;  %v2215_v12 = vpop.f32.mrb[10].mxu1  ;;  %v2287_v45 = vpop.f32.mrb[50].mxu0 }
 0x274   : > { %v2216_v50 = vpop.f32.mrb[11].mxu1  ;;  %v2288_v46 = vpop.f32.mrb[51].mxu0 }
 0x275   : > { %v2527_v47 = vadd.f32 %v2280_v25, %v2214_v43  ;;  %v2217_v51 = vadd.f32 %v2216_v50, %v2215_v12  ;;  %v2289_v52 = vadd.f32 %v2288_v46, %v2287_v45 }
 0x277   : > { %v2533_v53 = vadd.f32 %v2283_v34, %v2217_v51 }
 0x279   : > { %v2218_v54 = vpop.f32.mrb[12].mxu1  ;;  %v2290_v55 = vpop.f32.mrb[52].mxu0 }
 0x27a   : > { %v2219_v32 = vpop.f32.mrb[13].mxu1  ;;  %v2291_v38 = vpop.f32.mrb[53].mxu0 }
 0x27b   : > { %v2220_v57 = vadd.f32 %v2219_v32, %v2218_v54  ;;  %v2292_v56 = vadd.f32 %v2291_v38, %v2290_v55  ;;  %v2221_v58 = vpop.f32.mrb[14].mxu1  ;;  %v2293_v16 = vpop.f32.mrb[54].mxu0 }
 0x27c   : > { %v2222_v59 = vpop.f32.mrb[15].mxu1  ;;  %v2294_v60 = vpop.f32.mrb[55].mxu0 }
 0x27d   : > { %v2524_v26 = vadd.f32 %v2286_v44, %v2220_v57  ;;  %v2223_v42 = vadd.f32 %v2222_v59, %v2221_v58  ;;  %v2295_v62 = vadd.f32 %v2294_v60, %v2293_v16 }
 0x27f   : > { %v2530_v49 = vadd.f32 %v2289_v52, %v2223_v42 }
 0x281   : > { %v2224_v63 = vpop.f32.mrb[16].mxu1  ;;  %v2296_v0 = vpop.f32.mrb[56].mxu0 }
 0x282   : > { %v2225_v1 = vpop.f32.mrb[17].mxu1  ;;  %v2297_v9 = vpop.f32.mrb[57].mxu0 }
 0x283   : > { %v2226_v2 = vadd.f32 %v2225_v1, %v2224_v63  ;;  %v2298_v3 = vadd.f32 %v2297_v9, %v2296_v0  ;;  %v2227_v4 = vpop.f32.mrb[18].mxu1  ;;  %v2299_v5 = vpop.f32.mrb[58].mxu0 }
 0x284   : > { %v2228_v6 = vpop.f32.mrb[19].mxu1  ;;  %v2300_v7 = vpop.f32.mrb[59].mxu0 }
 0x285   : > { %v2539_v48 = vadd.f32 %v2292_v56, %v2226_v2  ;;  %v2229_v8 = vadd.f32 %v2228_v6, %v2227_v4  ;;  %v2301_v10 = vadd.f32 %v2300_v7, %v2299_v5 }
 0x287   : > { %v2545_v35 = vadd.f32 %v2295_v62, %v2229_v8 }
 0x289   : > { %v2230_v11 = vpop.f32.mrb[20].mxu1  ;;  %v2332_v61 = vpop.f32.mrb[60].mxu0 }
 0x28a   : > { %v2231_v13 = vpop.f32.mrb[21].mxu1  ;;  %v2333_v14 = vpop.f32.mrb[61].mxu0 }
 0x28b   : > { %v2232_v17 = vadd.f32 %v2231_v13, %v2230_v11  ;;  %v2334_v18 = vadd.f32 %v2333_v14, %v2332_v61  ;;  %v2233_v20 = vpop.f32.mrb[22].mxu1  ;;  %v2335_v21 = vpop.f32.mrb[62].mxu0 }
 0x28c   : > { %v2234_v22 = vpop.f32.mrb[23].mxu1  ;;  %v2336_v23 = vpop.f32.mrb[63].mxu0 }
 0x28d   : > { %v2536_v24 = vadd.f32 %v2298_v3, %v2232_v17  ;;  %v2235_v25 = vadd.f32 %v2234_v22, %v2233_v20  ;;  %v2337_v27 = vadd.f32 %v2336_v23, %v2335_v21  ;;  %v2516_v28 = vadd.f32 %v3382_v15, %v2334_v18  ;;  %v3411_v18 = vld [vmem:[%s3528_s3 + $0x2] ss:$0 sm:$0xff] }
 0x28f   : > { %v2542_v29 = vadd.f32 %v2301_v10, %v2235_v25  ;;  %v2522_v30 = vadd.f32 %v3384_v19, %v2337_v27 }
 0x291   : > { %v2338_v33 = vpop.f32.mrb[64].mxu0 }
 0x292   : > { %v2339_v34 = vpop.f32.mrb[65].mxu0 }
 0x293   : > { %v2340_v37 = vadd.f32 %v2339_v34, %v2338_v33  ;;  %v2341_v39 = vpop.f32.mrb[66].mxu0  ;;  %v3418_v34 = vld [vmem:[%s3528_s3 + $0x3] ss:$0 sm:$0xff] }
 0x294   : > { %v2342_v40 = vpop.f32.mrb[67].mxu0 }
 0x295   : > { %v2343_v41 = vadd.f32 %v2342_v40, %v2341_v39  ;;  %v2513_v43 = vadd.f32 %v3386_v31, %v2340_v37 }
 0x297   : > { %v2519_v44 = vadd.f32 %v3388_v36, %v2343_v41 }
 0x299   : > { %v2344_v12 = vpop.f32.mrb[68].mxu0 }
 0x29a   : > { %v2345_v45 = vpop.f32.mrb[69].mxu0 }
 0x29b   : > { %v2346_v50 = vadd.f32 %v2345_v45, %v2344_v12  ;;  %v2347_v46 = vpop.f32.mrb[70].mxu0 }
 0x29c   : > { %v2348_v51 = vpop.f32.mrb[71].mxu0 }
 0x29d   : > { %v2349_v52 = vadd.f32 %v2348_v51, %v2347_v46  ;;  %v2528_v15 = vadd.f32 %v2527_v47, %v2346_v50 }
 0x29f   : > { %v2534_v54 = vadd.f32 %v2533_v53, %v2349_v52 }
 0x2a1   : > { %v2350_v55 = vpop.f32.mrb[72].mxu0 }
 0x2a2   : > { %v2351_v19 = vpop.f32.mrb[73].mxu0 }
 0x2a3   : > { %v2352_v32 = vadd.f32 %v2351_v19, %v2350_v55  ;;  %v2353_v38 = vpop.f32.mrb[74].mxu0 }
 0x2a4   : > { %v2354_v57 = vpop.f32.mrb[75].mxu0 }
 0x2a5   : > { %v2355_v56 = vadd.f32 %v2354_v57, %v2353_v38  ;;  %v2525_v58 = vadd.f32 %v2524_v26, %v2352_v32  ;;  %v3403_v26 = vld [vmem:[%s3528_s3 + $0x1] ss:$0 sm:$0xff] }
 0x2a7   : > { %v2531_v16 = vadd.f32 %v2530_v49, %v2355_v56 }
 0x2a9   : > { %v2356_v59 = vpop.f32.mrb[76].mxu0 }
 0x2aa   : > { %v2357_v31 = vpop.f32.mrb[77].mxu0 }
 0x2ab   : > { %v2358_v60 = vadd.f32 %v2357_v31, %v2356_v59  ;;  %v2359_v36 = vpop.f32.mrb[78].mxu0 }
 0x2ac   : > { %v2360_v42 = vpop.f32.mrb[79].mxu0 }
 0x2ad   : > { %v2361_v62 = vadd.f32 %v2360_v42, %v2359_v36  ;;  %v3394_v63 = vadd.f32 %v2539_v48, %v2358_v60 }
 0x2af   : > { %v3396_v0 = vadd.f32 %v2545_v35, %v2361_v62 }
 0x2b1   : > { %v2362_v47 = vpop.f32.mrb[80].mxu0 }
 0x2b2   : > { %v2363_v53 = vpop.f32.mrb[81].mxu0 }
 0x2b3   : > { %v2364_v1 = vadd.f32 %v2363_v53, %v2362_v47  ;;  %v2365_v9 = vpop.f32.mrb[82].mxu0 }
 0x2b4   : > { %v2366_v2 = vpop.f32.mrb[83].mxu0 }
 0x2b5   : > { %v2367_v3 = vadd.f32 %v2366_v2, %v2365_v9  ;;  %v2537_v4 = vadd.f32 %v2536_v24, %v2364_v1 }
 0x2b7   : > { %v3398_v5 = vadd.f32 %v2542_v29, %v2367_v3 }
 0x2d1   : > { %v2502_v49 = vpop.f32.mrb[24].mxu1 }
 0x2d2   : > { %v2514_v6 = vadd.f32 %v2513_v43, %v2502_v49  ;;  %v1683_v7 = vpop.f32.mrb[25].mxu1 }
 0x2d3   : > { %v2517_v48 = vadd.f32 %v2516_v28, %v1683_v7  ;;  %v2503_v8 = vpop.f32.mrb[26].mxu1 }
 0x2d4   : > { %v1748_v10 = vadd.f32 %v2514_v6, %v3403_v26  ;;  %v2520_v35 = vadd.f32 %v2519_v44, %v2503_v8  ;;  %v1686_v11 = vpop.f32.mrb[27].mxu1 }
 0x2d5   : > { %v1746_v61 = vadd.f32 %v2517_v48, %v3403_v26  ;;  %v2523_v13 = vadd.f32 %v2522_v30, %v1686_v11 }
 0x2d6   : > { %v1760_v14 = vmul.f32 0.01, %v1748_v10  ;;  %v1749_v17 = vadd.f32 %v2520_v35, %v3403_v26 }
 0x2d7   : > { %v1758_v20 = vmul.f32 0.01, %v1746_v61  ;;  %v1747_v21 = vadd.f32 %v2523_v13, %v3403_v26 }
 0x2d8   : > { %v1772_v22 = vmax.f32 %v1748_v10, %v1760_v14  ;;  %v1761_v23 = vmul.f32 0.01, %v1749_v17 }
 0x2d9   : > { %v1770_v24 = vmax.f32 %v1746_v61, %v1758_v20  ;;  %v1759_v25 = vmul.f32 0.01, %v1747_v21  ;;  %v2506_v27 = vpop.f32.mrb[28].mxu1 }
 0x2da   : > { %v1788_v28 = vmul.f32 %v3411_v18, %v1772_v22  ;;  %v1773_v29 = vmax.f32 %v1749_v17, %v1761_v23  ;;  %v2526_v30 = vadd.f32 %v2525_v58, %v2506_v27  ;;  %v1699_v33 = vpop.f32.mrb[29].mxu1 }
 0x2db   : > { %v1786_v37 = vmul.f32 %v3411_v18, %v1770_v24  ;;  %v1771_v39 = vmax.f32 %v1747_v21, %v1759_v25  ;;  %v2529_v40 = vadd.f32 %v2528_v15, %v1699_v33  ;;  %v2507_v41 = vpop.f32.mrb[30].mxu1 }
 0x2dc   : > { %v1789_v43 = vmul.f32 %v3411_v18, %v1773_v29  ;;  %v1752_v44 = vadd.f32 %v2526_v30, %v3403_v26  ;;  %v2532_v12 = vadd.f32 %v2531_v16, %v2507_v41  ;;  %v1702_v45 = vpop.f32.mrb[31].mxu1  ;;  %v1804_v52 = vadd.f32 %v3418_v34, %v1788_v28 }
 0x2dd   : > { %v1787_v50 = vmul.f32 %v3411_v18, %v1771_v39  ;;  %v1750_v46 = vadd.f32 %v2529_v40, %v3403_v26  ;;  %v2535_v51 = vadd.f32 %v2534_v54, %v1702_v45  ;;  %v1802_v15 = vadd.f32 %v3418_v34, %v1786_v37 }
 0x2de   : > { %v1805_v55 = vadd.f32 %v3418_v34, %v1789_v43  ;;  %v1764_v19 = vmul.f32 0.01, %v1752_v44  ;;  %v1753_v32 = vadd.f32 %v2532_v12, %v3403_v26 }
 0x2df   : > { %v1803_v38 = vadd.f32 %v3418_v34, %v1787_v50  ;;  %v1762_v57 = vmul.f32 0.01, %v1750_v46  ;;  %v1751_v56 = vadd.f32 %v2535_v51, %v3403_v26 }
 0x2e0   : > { %v2143_v58 = vpack.c.bf16 %v1805_v55, %v1804_v52  ;;  %v1776_v16 = vmax.f32 %v1752_v44, %v1764_v19  ;;  %v1765_v59 = vmul.f32 0.01, %v1753_v32 }
 0x2e1   : > { %v2138_v31 = vpack.c.bf16 %v1803_v38, %v1802_v15  ;;  %v1774_v60 = vmax.f32 %v1750_v46, %v1762_v57  ;;  %v1763_v54 = vmul.f32 0.01, %v1751_v56  ;;  %v2510_v36 = vpop.f32.mrb[32].mxu1 }
 0x2e2   : > { %2165 = vst [vmem:[%s3432_s14 + $0x8] sm:$0xff] %v2143_v58   ;;  %v1792_v42 = vmul.f32 %v3411_v18, %v1776_v16  ;;  %v1777_v62 = vmax.f32 %v1753_v32, %v1765_v59  ;;  %v2538_v47 = vadd.f32 %v2537_v4, %v2510_v36  ;;  %v1715_v53 = vpop.f32.mrb[33].mxu1 }
 0x2e3   : > { %2139 = vst [vmem:[%s3432_s14] sm:$0xff] %v2138_v31   ;;  %v1790_v1 = vmul.f32 %v3411_v18, %v1774_v60  ;;  %v1775_v9 = vmax.f32 %v1751_v56, %v1763_v54  ;;  %v2541_v2 = vadd.f32 %v3394_v63, %v1715_v53  ;;  %v2511_v3 = vpop.f32.mrb[34].mxu1 }
 0x2e4   : > { %v1793_v49 = vmul.f32 %v3411_v18, %v1777_v62  ;;  %v1756_v6 = vadd.f32 %v2538_v47, %v3403_v26  ;;  %v2544_v7 = vadd.f32 %v3398_v5, %v2511_v3  ;;  %v1718_v48 = vpop.f32.mrb[35].mxu1  ;;  %v1808_v35 = vadd.f32 %v3418_v34, %v1792_v42 }
 0x2e5   : > { %v1791_v8 = vmul.f32 %v3411_v18, %v1775_v9  ;;  %v1754_v4 = vadd.f32 %v2541_v2, %v3403_v26  ;;  %v2547_v10 = vadd.f32 %v3396_v0, %v1718_v48  ;;  %v1806_v5 = vadd.f32 %v3418_v34, %v1790_v1 }
 0x2e6   : > { %v1809_v63 = vadd.f32 %v3418_v34, %v1793_v49  ;;  %v1768_v11 = vmul.f32 0.01, %v1756_v6  ;;  %v1757_v61 = vadd.f32 %v2544_v7, %v3403_v26 }
 0x2e7   : > { %v1807_v13 = vadd.f32 %v3418_v34, %v1791_v8  ;;  %v1766_v14 = vmul.f32 0.01, %v1754_v4  ;;  %v1755_v17 = vadd.f32 %v2547_v10, %v3403_v26 }
 0x2e8   : > { %v2153_v20 = vpack.c.bf16 %v1809_v63, %v1808_v35  ;;  %v1780_v0 = vmax.f32 %v1756_v6, %v1768_v11  ;;  %v1769_v21 = vmul.f32 0.01, %v1757_v61 }
 0x2e9   : > { %v2148_v22 = vpack.c.bf16 %v1807_v13, %v1806_v5  ;;  %v1778_v23 = vmax.f32 %v1754_v4, %v1766_v14  ;;  %v1767_v24 = vmul.f32 0.01, %v1755_v17 }
 0x2ea   : > { %2167 = vst [vmem:[%s3432_s14 + $0x18] sm:$0xff] %v2153_v20   ;;  %v1796_v25 = vmul.f32 %v3411_v18, %v1780_v0  ;;  %v1781_v27 = vmax.f32 %v1757_v61, %v1769_v21 }
 0x2eb   : > { %2166 = vst [vmem:[%s3432_s14 + $0x10] sm:$0xff] %v2148_v22   ;;  %v1794_v28 = vmul.f32 %v3411_v18, %v1778_v23  ;;  %v1779_v29 = vmax.f32 %v1755_v17, %v1767_v24 }
 0x2ec   : > { %v1797_v26 = vmul.f32 %v3411_v18, %v1781_v27  ;;  %v1812_v33 = vadd.f32 %v3418_v34, %v1796_v25 }
 0x2ed   : > { %v1795_v30 = vmul.f32 %v3411_v18, %v1779_v29  ;;  %v1810_v39 = vadd.f32 %v3418_v34, %v1794_v28 }
 0x2ee   : > { %v1813_v37 = vadd.f32 %v3418_v34, %v1797_v26 }
 0x2ef   : > { %v1811_v40 = vadd.f32 %v3418_v34, %v1795_v30 }
 0x2f0   : > { %v2163_v41 = vpack.c.bf16 %v1813_v37, %v1812_v33 }
 0x2f1   : > { %v2158_v18 = vpack.c.bf16 %v1811_v40, %v1810_v39 }
 0x2f2   : > { %2169 = vst [vmem:[%s3432_s14 + $0x28] sm:$0xff] %v2163_v41  }
 0x2f3   : > { %2168 = vst [vmem:[%s3432_s14 + $0x20] sm:$0xff] %v2158_v18  }
 0x2f4   : > { %2868 = shalt.err (!%p2865_p7)
}
 0x2f5   : > { %s2869_s7 = scalar_lea.hbm %s3467_s2, 768  ;;  %s2873_s30 = scalar_lea.hbm %s3529_s4, 3072 }
 0x2f6   : > { %p2870_p12 = scmp.ne.s32.totalorder %s3467_s2, %s2869_s7  ;;  %p2874_p5 = scmp.lt.u32.totalorder %s3467_s2, %s3529_s4 }
 0x2f7   : > { %p2875_p9 = scmp.lt.u32.totalorder %s2873_s30, %s2869_s7  ;;  %p2877_p4 = scmp.lt.u32.totalorder %s2869_s7, %s3467_s2 }
 0x2f8   : > { %p2871_p1 = pnand %p2870_p12, %p3142_p8 }
 0x2f9   : > { %p2876_p0 = por %p2875_p9, %p2874_p5 }
 0x2fa   : > { %p2872_p2 = pneg %p2871_p1 }
 0x2fb   : > { %p2878_p10 = por %p2877_p4, %p2876_p0 }
 0x2fd   : > { %p2879_p6 = pnand %p2878_p10, %p2872_p2 }
 0x2ff   : > { %2882 = shalt.err (!%p2879_p6)
}
 0x300   : > { %s2967_s14 = smov 64   ;;  %s2968_s23 = smov 4  }
 0x301   : > { %2588 = dma.vmem_to_hbm [thread:$0]  (%p3142_p8), %s3469_s5, 768, %s3467_s2, %s1875_s11, %s2967_s14, %s2967_s14, %s2968_s23  }
 0x302 PF: > { %s3563_s24 = sld [smem:[#allocation13_spill]]  ;;  %p2610_p11 = scmp.ge.s32.totalorder %s2957_s22, 2 }
 0x303   : > { %s1905_s18 = sand.u32 1, %s2929_s15  }
 0x304   : > { %s1906_s19 = scalar_lea.sflag [#allocation4], %s1905_s18 }
 0x308   : > { %p3564_p13 = scmp.ne.s32.totalorder %s3563_s24, 0 }
 0x30a   : > { %p2602_p3 = pnand %p2610_p11, %p3564_p13 }
 0x30c   : > { %2924 = dma.done.wait (!%p2602_p3), %s1906_s19, 768  }
 0x30d   : > { %2926 = vsyncadd (!%p2602_p3), %s1906_s19, 4294966528  ;;  %s21_s22 = sadd.s32 1, %s2957_s22   ;;  %s3565_s18 = sld [smem:[#allocation12_spill]] }
 0x30e   : > { %p18_p7 = scmp.ge.s32.totalorder %s21_s22, 6   ;;  %s3566_s20 = sld [smem:[#allocation14_spill]] }
 0x30f   : > { %s3567_s8 = sld [smem:[#allocation15_spill]]  ;;  %s3568_s15 = smov %s2933_s16 }
 0x310   : > { %s3569_s16 = smov %s2937_s17  ;;  %s3570_s17 = smov %s3161_s1 }
 0x311   : > { %s3571_s19 = smov %s2953_s21  ;;  %20 = sbr.rel (!%p18_p7) target bundleno = 11 (0xb), region = 91 }
 0x315   : > { %s3572_s21 = smov %s3567_s8 }
 0x318   :  { %1911 = vsyncpa [#allocation3], 1 }
 0x319   :  { %1913 = vsyncpa [#allocation3 + $0x1], 1 }
 0x31a   :  { %1914 = vsyncpa [#allocation6], 1 }
 0x31b   :  { %1915 = vsyncpa [#allocation4], 1 }
 0x31c   :  { %1917 = vsyncpa [#allocation4 + $0x1], 1 }

</bundles_post_ra>
